<compile_context>
chip_gen: v7x
topology: tpu7x:2x2x1
jax: 0.10.0
libtpu: 0.0.40
codegen_flags: <defaults>
</compile_context>

<pallas_src>
import jax
import jax.numpy as jnp
from jax.experimental import pallas as pl
from jax.experimental.pallas import tpu as pltpu

BN_EPS = 1e-5


def generator_kernel(x_ref,
                     w1_ref, g1_ref, beta1_ref,
                     w2_ref, g2_ref, beta2_ref,
                     w3_ref, b3_ref,
                     o_ref):
    inv_b = 1.0 / x_ref.shape[0]

    def bn_relu_layer(h_bf16, w_ref, g_ref, beta_ref):
        # h_bf16: [B, K] bf16, w_ref: [K, N] bf16 -> f32 accumulate on MXU.
        h = jnp.dot(h_bf16, w_ref[...], preferred_element_type=jnp.float32)
        # One-pass batch statistics (training-mode BN, biased variance).
        mean = jnp.sum(h, axis=0, keepdims=True) * inv_b
        mean_sq = jnp.sum(h * h, axis=0, keepdims=True) * inv_b
        var = mean_sq - mean * mean
        # Folded BN affine: one FMA per element.
        scale = g_ref[...] * jax.lax.rsqrt(var + BN_EPS)
        shift = beta_ref[...] - mean * scale
        hn = jnp.maximum(h * scale + shift, 0.0)
        return hn.astype(jnp.bfloat16)   # next MXU operand

    h1 = bn_relu_layer(x_ref[...], w1_ref, g1_ref, beta1_ref)
    h2 = bn_relu_layer(h1, w2_ref, g2_ref, beta2_ref)
    y = jnp.tanh(jnp.dot(h2, w3_ref[...],
                         preferred_element_type=jnp.float32) + b3_ref[...])
    o_ref[...] = y.astype(o_ref.dtype)


def init_params(key, input_dim, hidden_dim, output_dim):
    ks = jax.random.split(key, 9)

    def w(k, fan_in, fan_out):
        return (jax.random.normal(k, (fan_in, fan_out), jnp.float32)
                * (1.0 / jnp.sqrt(fan_in)))

    w1 = w(ks[0], input_dim, hidden_dim)
    b1 = 0.1 * jax.random.normal(ks[1], (1, hidden_dim), jnp.float32)
    g1 = 1.0 + 0.1 * jax.random.normal(ks[2], (1, hidden_dim), jnp.float32)
    be1 = 0.1 * jax.random.normal(ks[3], (1, hidden_dim), jnp.float32)
    w2 = w(ks[4], hidden_dim, hidden_dim)
    b2 = 0.1 * jax.random.normal(ks[5], (1, hidden_dim), jnp.float32)
    g2 = 1.0 + 0.1 * jax.random.normal(ks[6], (1, hidden_dim), jnp.float32)
    be2 = 0.1 * jax.random.normal(ks[7], (1, hidden_dim), jnp.float32)
    w3 = w(ks[8], hidden_dim, output_dim)
    b3 = jnp.zeros((1, output_dim), jnp.float32)
    return (w1, b1, g1, be1, w2, b2, g2, be2, w3, b3)


def generator_forward(noise, params):
    B = noise.shape[0]
    x = noise.reshape(B, -1).astype(jnp.bfloat16)   # torch .flatten(1) + MXU dtype
    (w1, b1, g1, be1, w2, b2, g2, be2, w3, b3) = params
    del b1, b2   # bias before BatchNorm is cancelled by the mean subtraction
    w1b = w1.astype(jnp.bfloat16)
    w2b = w2.astype(jnp.bfloat16)
    w3b = w3.astype(jnp.bfloat16)

    in_dim = x.shape[1]
    hid = w1.shape[1]
    out_dim = w3.shape[1]

    flops = 2 * B * (in_dim * hid + hid * hid + hid * out_dim)
    bytes_accessed = (x.size * 2 + w1b.size * 2 + w2b.size * 2 + w3b.size * 2
                      + (g1.size + be1.size + g2.size + be2.size + b3.size) * 4
                      + B * out_dim * 4)

    vmem = pl.BlockSpec(memory_space=pltpu.MemorySpace.VMEM)
    return pl.pallas_call(
        generator_kernel,
        out_shape=jax.ShapeDtypeStruct((B, out_dim), jnp.float32),
        in_specs=[vmem] * 9,
        out_specs=vmem,
        cost_estimate=pl.CostEstimate(flops=flops,
                                      transcendentals=B * out_dim,
                                      bytes_accessed=bytes_accessed),
    )(x, w1b, g1, be1, w2b, g2, be2, w3b, b3)


def generator_ref(noise, params):
    """Pure-JAX reference with PyTorch semantics (biases kept, two-pass BN),
    using bf16 matmul operands to mirror MXU precision."""
    (w1, b1, g1, be1, w2, b2, g2, be2, w3, b3) = params
    x = noise.reshape(noise.shape[0], -1)

    def dot_bf16(a, w):
        return jnp.dot(a.astype(jnp.bfloat16), w.astype(jnp.bfloat16),
                       preferred_element_type=jnp.float32)

    def bn_relu(h, g, be):
        mean = jnp.mean(h, axis=0, keepdims=True)
        var = jnp.mean((h - mean) ** 2, axis=0, keepdims=True)
        return jnp.maximum((h - mean) / jnp.sqrt(var + BN_EPS) * g + be, 0.0)

    h1 = bn_relu(dot_bf16(x, w1) + b1, g1, be1)
    h2 = bn_relu(dot_bf16(h1, w2) + b2, g2, be2)
    return jnp.tanh(dot_bf16(h2, w3) + b3)


if __name__ == "__main__":
    # Small, lane-aligned shapes consistent with the module
    # (input_dim, hidden_dim, output_dim); batch sized to occupy the MXU rows.
    B, INPUT_DIM, HIDDEN_DIM, OUTPUT_DIM = 128, 128, 256, 128

    key = jax.random.PRNGKey(0)
    k_noise, k_params = jax.random.split(key)
    # GAN-style latent (B, C, 1, 1); flatten(1) -> (B, C)
    noise = jax.random.normal(k_noise, (B, INPUT_DIM, 1, 1), jnp.float32)
    params = init_params(k_params, INPUT_DIM, HIDDEN_DIM, OUTPUT_DIM)

    out = generator_forward(noise, params)
    out = jax.block_until_ready(out)

    ref = generator_ref(noise, params)
    assert out.shape == (B, OUTPUT_DIM)
    assert jnp.allclose(out, ref, atol=1e-3, rtol=1e-3), "mismatch vs JAX reference"
    print("KERNEL_OK")
</pallas_src>

<mosaic_0001>
module attributes {stable_mosaic.version = 11 : i64} {
  func.func @generator_kernel(%arg0: memref<128x128xbf16, #tpu.memory_space<vmem>>, %arg1: memref<128x256xbf16, #tpu.memory_space<vmem>>, %arg2: memref<1x256xf32, #tpu.memory_space<vmem>>, %arg3: memref<1x256xf32, #tpu.memory_space<vmem>>, %arg4: memref<256x256xbf16, #tpu.memory_space<vmem>>, %arg5: memref<1x256xf32, #tpu.memory_space<vmem>>, %arg6: memref<1x256xf32, #tpu.memory_space<vmem>>, %arg7: memref<256x128xbf16, #tpu.memory_space<vmem>>, %arg8: memref<1x128xf32, #tpu.memory_space<vmem>>, %arg9: memref<128x128xf32, #tpu.memory_space<vmem>>) attributes {dimension_semantics = [], scalar_prefetch = 0 : i64, scratch_operands = 0 : i64, tpu.core_type = #tpu.core_type<tc>} {
    %c0 = arith.constant 0 : index
    %c0_0 = arith.constant 0 : index
    %0 = vector.load %arg0[%c0, %c0_0] : memref<128x128xbf16, #tpu.memory_space<vmem>>, vector<128x128xbf16>
    %c0_1 = arith.constant 0 : index
    %c0_2 = arith.constant 0 : index
    %1 = vector.load %arg1[%c0_1, %c0_2] : memref<128x256xbf16, #tpu.memory_space<vmem>>, vector<128x256xbf16>
    %cst = arith.constant dense<0.000000e+00> : vector<128x256xf32>
    %2 = tpu.matmul %0, %1, %cst {dimension_numbers = #tpu.dot_dimension_numbers<[1], [0], [0], [1], [0, 0, 1, 1], [], []>} : vector<128x128xbf16>, vector<128x256xbf16>, vector<128x256xf32> -> vector<128x256xf32>
    %cst_3 = arith.constant dense<0.000000e+00> : vector<256xf32>
    %3 = vector.multi_reduction <add>, %2, %cst_3 [0] : vector<128x256xf32> to vector<256xf32>
    %4 = vector.shape_cast %3 : vector<256xf32> to vector<1x256xf32>
    %cst_4 = arith.constant 7.812500e-03 : f32
    %5 = vector.broadcast %cst_4 : f32 to vector<1x256xf32>
    %6 = arith.mulf %4, %5 : vector<1x256xf32>
    %7 = arith.mulf %2, %2 : vector<128x256xf32>
    %cst_5 = arith.constant dense<0.000000e+00> : vector<256xf32>
    %8 = vector.multi_reduction <add>, %7, %cst_5 [0] : vector<128x256xf32> to vector<256xf32>
    %9 = vector.shape_cast %8 : vector<256xf32> to vector<1x256xf32>
    %cst_6 = arith.constant 7.812500e-03 : f32
    %10 = vector.broadcast %cst_6 : f32 to vector<1x256xf32>
    %11 = arith.mulf %9, %10 : vector<1x256xf32>
    %12 = arith.mulf %6, %6 : vector<1x256xf32>
    %13 = arith.subf %11, %12 : vector<1x256xf32>
    %c0_7 = arith.constant 0 : index
    %c0_8 = arith.constant 0 : index
    %14 = vector.load %arg2[%c0_7, %c0_8] : memref<1x256xf32, #tpu.memory_space<vmem>>, vector<1x256xf32>
    %cst_9 = arith.constant 9.99999974E-6 : f32
    %15 = vector.broadcast %cst_9 : f32 to vector<1x256xf32>
    %16 = arith.addf %13, %15 : vector<1x256xf32>
    %17 = math.rsqrt %16 : vector<1x256xf32>
    %18 = arith.mulf %14, %17 : vector<1x256xf32>
    %c0_10 = arith.constant 0 : index
    %c0_11 = arith.constant 0 : index
    %19 = vector.load %arg3[%c0_10, %c0_11] : memref<1x256xf32, #tpu.memory_space<vmem>>, vector<1x256xf32>
    %20 = arith.mulf %6, %18 : vector<1x256xf32>
    %21 = arith.subf %19, %20 : vector<1x256xf32>
    %22 = vector.broadcast %18 : vector<1x256xf32> to vector<128x256xf32>
    %23 = arith.mulf %2, %22 : vector<128x256xf32>
    %24 = vector.broadcast %21 : vector<1x256xf32> to vector<128x256xf32>
    %25 = arith.addf %23, %24 : vector<128x256xf32>
    %cst_12 = arith.constant 0.000000e+00 : f32
    %26 = vector.broadcast %cst_12 : f32 to vector<128x256xf32>
    %27 = arith.maximumf %25, %26 : vector<128x256xf32>
    %28 = arith.truncf %27 : vector<128x256xf32> to vector<128x256xbf16>
    %c0_13 = arith.constant 0 : index
    %c0_14 = arith.constant 0 : index
    %29 = vector.load %arg4[%c0_13, %c0_14] : memref<256x256xbf16, #tpu.memory_space<vmem>>, vector<256x256xbf16>
    %cst_15 = arith.constant dense<0.000000e+00> : vector<128x256xf32>
    %30 = tpu.matmul %28, %29, %cst_15 {dimension_numbers = #tpu.dot_dimension_numbers<[1], [0], [0], [1], [0, 0, 1, 1], [], []>} : vector<128x256xbf16>, vector<256x256xbf16>, vector<128x256xf32> -> vector<128x256xf32>
    %cst_16 = arith.constant dense<0.000000e+00> : vector<256xf32>
    %31 = vector.multi_reduction <add>, %30, %cst_16 [0] : vector<128x256xf32> to vector<256xf32>
    %32 = vector.shape_cast %31 : vector<256xf32> to vector<1x256xf32>
    %cst_17 = arith.constant 7.812500e-03 : f32
    %33 = vector.broadcast %cst_17 : f32 to vector<1x256xf32>
    %34 = arith.mulf %32, %33 : vector<1x256xf32>
    %35 = arith.mulf %30, %30 : vector<128x256xf32>
    %cst_18 = arith.constant dense<0.000000e+00> : vector<256xf32>
    %36 = vector.multi_reduction <add>, %35, %cst_18 [0] : vector<128x256xf32> to vector<256xf32>
    %37 = vector.shape_cast %36 : vector<256xf32> to vector<1x256xf32>
    %cst_19 = arith.constant 7.812500e-03 : f32
    %38 = vector.broadcast %cst_19 : f32 to vector<1x256xf32>
    %39 = arith.mulf %37, %38 : vector<1x256xf32>
    %40 = arith.mulf %34, %34 : vector<1x256xf32>
    %41 = arith.subf %39, %40 : vector<1x256xf32>
    %c0_20 = arith.constant 0 : index
    %c0_21 = arith.constant 0 : index
    %42 = vector.load %arg5[%c0_20, %c0_21] : memref<1x256xf32, #tpu.memory_space<vmem>>, vector<1x256xf32>
    %cst_22 = arith.constant 9.99999974E-6 : f32
    %43 = vector.broadcast %cst_22 : f32 to vector<1x256xf32>
    %44 = arith.addf %41, %43 : vector<1x256xf32>
    %45 = math.rsqrt %44 : vector<1x256xf32>
    %46 = arith.mulf %42, %45 : vector<1x256xf32>
    %c0_23 = arith.constant 0 : index
    %c0_24 = arith.constant 0 : index
    %47 = vector.load %arg6[%c0_23, %c0_24] : memref<1x256xf32, #tpu.memory_space<vmem>>, vector<1x256xf32>
    %48 = arith.mulf %34, %46 : vector<1x256xf32>
    %49 = arith.subf %47, %48 : vector<1x256xf32>
    %50 = vector.broadcast %46 : vector<1x256xf32> to vector<128x256xf32>
    %51 = arith.mulf %30, %50 : vector<128x256xf32>
    %52 = vector.broadcast %49 : vector<1x256xf32> to vector<128x256xf32>
    %53 = arith.addf %51, %52 : vector<128x256xf32>
    %cst_25 = arith.constant 0.000000e+00 : f32
    %54 = vector.broadcast %cst_25 : f32 to vector<128x256xf32>
    %55 = arith.maximumf %53, %54 : vector<128x256xf32>
    %56 = arith.truncf %55 : vector<128x256xf32> to vector<128x256xbf16>
    %c0_26 = arith.constant 0 : index
    %c0_27 = arith.constant 0 : index
    %57 = vector.load %arg7[%c0_26, %c0_27] : memref<256x128xbf16, #tpu.memory_space<vmem>>, vector<256x128xbf16>
    %cst_28 = arith.constant dense<0.000000e+00> : vector<128x128xf32>
    %58 = tpu.matmul %56, %57, %cst_28 {dimension_numbers = #tpu.dot_dimension_numbers<[1], [0], [0], [1], [0, 0, 1, 1], [], []>} : vector<128x256xbf16>, vector<256x128xbf16>, vector<128x128xf32> -> vector<128x128xf32>
    %c0_29 = arith.constant 0 : index
    %c0_30 = arith.constant 0 : index
    %59 = vector.load %arg8[%c0_29, %c0_30] : memref<1x128xf32, #tpu.memory_space<vmem>>, vector<1x128xf32>
    %60 = vector.broadcast %59 : vector<1x128xf32> to vector<128x128xf32>
    %61 = arith.addf %58, %60 : vector<128x128xf32>
    %62 = math.tanh %61 : vector<128x128xf32>
    %c0_31 = arith.constant 0 : index
    %c0_32 = arith.constant 0 : index
    %63 = vector.load %arg9[%c0_31, %c0_32] : memref<128x128xf32, #tpu.memory_space<vmem>>, vector<128x128xf32>
    tpu.vector_store %arg9[%c0_31, %c0_32], %62 {strides = array<i32>} : memref<128x128xf32, #tpu.memory_space<vmem>>, vector<128x128xf32>,
    return
  }
}

</mosaic_0001>

<bundles_post_ra>
// kernel: tpu_custom_call.1
= control target key start
LH: loop header
LB: loop body
LE: loop exit
PB: predicated region body
PF: predicated region fallthrough
CT: control target
= control target key end

     0   :  { %14 = vsyncpa [#allocation3], 0  ;;  %s2696_s0 = inlined_call_operand.hbm [shape: bf16[128,128], index: 0, kind: input, shape index: {}]   ;;  %s2697_s1 = inlined_call_operand.hbm [shape: bf16[128,256], index: 1, kind: input, shape index: {}]   ;;  %s2698_s2 = inlined_call_operand.vmem [shape: f32[1,256], index: 2, kind: input, shape index: {}]   ;;  %s2699_s3 = inlined_call_operand.vmem [shape: f32[1,256], index: 3, kind: input, shape index: {}]   ;;  %s2700_s4 = inlined_call_operand.hbm [shape: bf16[256,256], index: 4, kind: input, shape index: {}]   ;;  %s2701_s5 = inlined_call_operand.vmem [shape: f32[1,256], index: 5, kind: input, shape index: {}]   ;;  %s2702_s6 = inlined_call_operand.vmem [shape: f32[1,256], index: 6, kind: input, shape index: {}]   ;;  %s2703_s7 = inlined_call_operand.hbm [shape: bf16[256,128], index: 7, kind: input, shape index: {}]   ;;  %s2704_s8 = inlined_call_operand.vmem [shape: f32[1,128], index: 8, kind: input, shape index: {}]   ;;  %s2705_s9 = inlined_call_operand.hbm [shape: f32[128,128], index: 9, kind: output, shape index: {}]  }
   0x1   :  { %15 = vsyncpa [#allocation6], 0 }
   0x2   :  { %16 = vsyncpa [#allocation9], 0 }
   0x3   :  { %17 = vsyncpa [#allocation4], 0  ;;  %s1976_s30 = smov [#allocation5]   ;;  %s1858_s13 = scalar_lea.hbm %s2697_s1, 2048 }
   0x4   :  { %s35_s10 = sshll.u32 %s1976_s30, 4  ;;  %p1859_p0 = scmp.ne.s32.totalorder %s2697_s1, %s1858_s13  ;;  %s36_s10 = int_to_ptr.vmem [resolvable:$true] %s35_s10 }
   0x5   :  { %p1862_p1 = scmp.lt.u32.totalorder %s1858_s13, %s2697_s1 }
   0x7   :  { %p1864_p2 = pnand %p1862_p1, %p1859_p0 }
   0x9   :  { %1867 = shalt.err (!%p1864_p2)
}
   0xa   :  { %s1868_s18 = scalar_lea.vmem %s36_s10, 2048  ;;  %p1873_p4 = scmp.lt.s32.totalorder %s36_s10, %s36_s10 }
   0xb   :  { %p1869_p3 = scmp.ne.s32.totalorder %s36_s10, %s1868_s18  ;;  %p1874_p5 = scmp.lt.s32.totalorder %s1868_s18, %s1868_s18 }
   0xd   :  { %p1875_p6 = por %p1874_p5, %p1873_p4 }
   0xf   :  { %p1876_p7 = pnand %p1875_p6, %p1869_p3 }
  0x11   :  { %1879 = shalt.err (!%p1876_p7)
}
  0x12   :  { %s1977_s19 = smov 128   ;;  %s1978_s20 = smov 8  }
  0x13   :  { %41 = dma.hbm_to_vmem [thread:$0]  %s2697_s1, 2048, %s36_s10, [#allocation6], %s1977_s19, %s1977_s19, %s1978_s20  }
  0x14   :  { %s1979_s23 = smov [#allocation2]   ;;  %s1880_s27 = scalar_lea.hbm %s2696_s0, 1024 }
  0x15   :  { %s23_s24 = sshll.u32 %s1979_s23, 4  ;;  %p1881_p8 = scmp.ne.s32.totalorder %s2696_s0, %s1880_s27  ;;  %s24_s24 = int_to_ptr.vmem [resolvable:$true] %s23_s24 }
  0x16   :  { %p1884_p9 = scmp.lt.u32.totalorder %s1880_s27, %s2696_s0 }
  0x18   :  { %p1886_p10 = pnand %p1884_p9, %p1881_p8 }
  0x1a   :  { %1889 = shalt.err (!%p1886_p10)
}
  0x1b   :  { %s1890_s12 = scalar_lea.vmem %s24_s24, 1024  ;;  %p1895_p12 = scmp.lt.s32.totalorder %s24_s24, %s24_s24 }
  0x1c   :  { %p1891_p11 = scmp.ne.s32.totalorder %s24_s24, %s1890_s12  ;;  %p1896_p13 = scmp.lt.s32.totalorder %s1890_s12, %s1890_s12 }
  0x1e   :  { %p1897_p0 = por %p1896_p13, %p1895_p12 }
  0x20   :  { %p1898_p1 = pnand %p1897_p0, %p1891_p11 }
  0x22   :  { %1901 = shalt.err (!%p1898_p1)
}
  0x23   :  { %s1980_s1 = smov 64   ;;  %s1981_s10 = smov 4  }
  0x24   :  { %29 = dma.hbm_to_vmem [thread:$0]  %s2696_s0, 1024, %s24_s24, [#allocation3], %s1980_s1, %s1980_s1, %s1981_s10  }
  0x25   :  { %s1982_s15 = smov [#allocation7]   ;;  %s1983_s17 = smov [#allocation8]  }
  0x26   :  { %s51_s16 = sshll.u32 %s1982_s15, 4  ;;  %s67_s18 = sshll.u32 %s1983_s17, 4  ;;  %s52_s16 = int_to_ptr.vmem [resolvable:$true] %s51_s16  ;;  %s2067_s18 = int_to_ptr.vmem [resolvable:$true] %s67_s18 }
  0x27   :  { %s1902_s23 = scalar_lea.hbm %s2700_s4, 4096 }
  0x28   :  { %p1903_p2 = scmp.ne.s32.totalorder %s2700_s4, %s1902_s23  ;;  %p1906_p3 = scmp.lt.u32.totalorder %s1902_s23, %s2700_s4 }
  0x2a   :  { %p1908_p4 = pnand %p1906_p3, %p1903_p2 }
  0x2c   :  { %1911 = shalt.err (!%p1908_p4)
}
  0x2d   :  { %s1912_s0 = scalar_lea.vmem %s52_s16, 4096  ;;  %p1917_p6 = scmp.lt.s32.totalorder %s52_s16, %s52_s16 }
  0x2e   :  { %p1913_p5 = scmp.ne.s32.totalorder %s52_s16, %s1912_s0  ;;  %p1918_p7 = scmp.lt.s32.totalorder %s1912_s0, %s1912_s0 }
  0x30   :  { %p1919_p8 = por %p1918_p7, %p1917_p6 }
  0x32   :  { %p1920_p9 = pnand %p1919_p8, %p1913_p5 }
  0x34   :  { %1923 = shalt.err (!%p1920_p9)
}
  0x35   :  { %57 = dma.hbm_to_vmem [thread:$0]  %s2700_s4, 4096, %s52_s16, [#allocation6], %s1977_s19, %s1977_s19, %s1978_s20  }
  0x36   :  { %s1924_s12 = scalar_lea.hbm %s2703_s7, 2048 }
  0x37   :  { %p1925_p10 = scmp.ne.s32.totalorder %s2703_s7, %s1924_s12  ;;  %p1928_p11 = scmp.lt.u32.totalorder %s1924_s12, %s2703_s7 }
  0x39   :  { %p1930_p12 = pnand %p1928_p11, %p1925_p10 }
  0x3b   :  { %1933 = shalt.err (!%p1930_p12)
}
  0x3c   :  { %s1934_s21 = scalar_lea.vmem %s2067_s18, 2048  ;;  %p1939_p0 = scmp.lt.s32.totalorder %s2067_s18, %s2067_s18 }
  0x3d   :  { %p1935_p13 = scmp.ne.s32.totalorder %s2067_s18, %s1934_s21  ;;  %p1940_p1 = scmp.lt.s32.totalorder %s1934_s21, %s1934_s21 }
  0x3f   :  { %p1941_p2 = por %p1940_p1, %p1939_p0 }
  0x41   :  { %p1942_p3 = pnand %p1941_p2, %p1935_p13 }
  0x43   :  { %1945 = shalt.err (!%p1942_p3)
}
  0x44   :  { %73 = dma.hbm_to_vmem [thread:$0]  %s2703_s7, 2048, %s2067_s18, [#allocation9], %s1980_s1, %s1980_s1, %s1981_s10  }
  0x45   :  { %1968 = dma.done.wait [#allocation3], 1024  }
  0x46   :  { %1969 = vsyncadd [#allocation3], 4294966272 }
  0x47   :  { %1970 = dma.done.wait [#allocation6], 6144  }
  0x48   :  { %1971 = vsyncadd [#allocation6], 4294961152 }
  0x49   :  { %1972 = dma.done.wait [#allocation9], 2048  }
  0x4a   :  { %1973 = vsyncadd [#allocation9], 4294965248  ;;  %v1984_v0 = vmov 0   ;;  %v1722_v1 = vld [vmem:[#allocation5 + $0x4] ss:$8 sps:$4 sm:$0xff]   ;;  %v1748_v19 = vld [vmem:[#allocation2 + $0x10] sm:$0xff]  }
  0x4b   :  { %281 = vmatprep.mubr.bf16.mxu0 %v1984_v0  ;;  %v1724_v2 = vld [vmem:[#allocation5] ss:$8 sps:$4 sm:$0xff]   ;;  %249 = vmatprep.subr.bf16.mxu0 %v1722_v1  ;;  %v1725_v3 = vld [vmem:[#allocation5 + $0x14] ss:$8 sps:$4 sm:$0xff]   ;;  %v1727_v4 = vld [vmem:[#allocation5 + $0x10] ss:$8 sps:$4 sm:$0xff]  }
  0x4c   :  { %250 = vmatpush1.bf16.msra.mxu0 %v1724_v2  ;;  %v1728_v5 = vld [vmem:[#allocation5 + $0x24] ss:$8 sps:$4 sm:$0xff]   ;;  %v1730_v6 = vld [vmem:[#allocation5 + $0x20] ss:$8 sps:$4 sm:$0xff]   ;;  %v1731_v7 = vld [vmem:[#allocation5 + $0x34] ss:$8 sps:$4 sm:$0xff]  }
  0x4d   :  { %251 = vmatprep.subr.bf16.mxu0 %v1725_v3  ;;  %v1733_v8 = vld [vmem:[#allocation5 + $0x30] ss:$8 sps:$4 sm:$0xff]   ;;  %v1734_v9 = vld [vmem:[#allocation5 + $0x44] ss:$8 sps:$4 sm:$0xff]   ;;  %v1736_v10 = vld [vmem:[#allocation5 + $0x40] ss:$8 sps:$4 sm:$0xff]  }
  0x4e   :  { %v1737_v11 = vld [vmem:[#allocation5 + $0x54] ss:$8 sps:$4 sm:$0xff]   ;;  %v1739_v12 = vld [vmem:[#allocation5 + $0x50] ss:$8 sps:$4 sm:$0xff]   ;;  %v1740_v13 = vld [vmem:[#allocation5 + $0x64] ss:$8 sps:$4 sm:$0xff]  }
  0x4f   :  { %v1742_v14 = vld [vmem:[#allocation5 + $0x60] ss:$8 sps:$4 sm:$0xff]   ;;  %v1743_v15 = vld [vmem:[#allocation5 + $0x74] ss:$8 sps:$4 sm:$0xff]   ;;  %v1745_v16 = vld [vmem:[#allocation5 + $0x70] ss:$8 sps:$4 sm:$0xff]  }
  0x50   :  { %252 = vmatpush1.bf16.msra.mxu0 %v1727_v4  ;;  %v1746_v17 = vld [vmem:[#allocation2] sm:$0xff]   ;;  %v1747_v18 = vld [vmem:[#allocation2 + $0x8] sm:$0xff]   ;;  %v1749_v20 = vld [vmem:[#allocation2 + $0x18] sm:$0xff]  }
  0x51   :  { %253 = vmatprep.subr.bf16.mxu0 %v1728_v5  ;;  %v1750_v21 = vld [vmem:[#allocation2 + $0x20] sm:$0xff]   ;;  %v1751_v22 = vld [vmem:[#allocation2 + $0x28] sm:$0xff]   ;;  %v1752_v23 = vld [vmem:[#allocation2 + $0x30] sm:$0xff]  }
  0x52   :  { %v1753_v24 = vld [vmem:[#allocation2 + $0x38] sm:$0xff]   ;;  %v1754_v25 = vld [vmem:[#allocation7 + $0x4] ss:$8 sps:$4 sm:$0xff]   ;;  %v1756_v26 = vld [vmem:[#allocation7] ss:$8 sps:$4 sm:$0xff]  }
  0x53   :  { %858 = vmatprep.subr.bf16.mxu1 %v1754_v25  ;;  %v1757_v27 = vld [vmem:[#allocation7 + $0x14] ss:$8 sps:$4 sm:$0xff]   ;;  %v1759_v28 = vld [vmem:[#allocation7 + $0x10] ss:$8 sps:$4 sm:$0xff]   ;;  %v1760_v29 = vld [vmem:[#allocation7 + $0x24] ss:$8 sps:$4 sm:$0xff]  }
  0x54   :  { %254 = vmatpush1.bf16.msra.mxu0 %v1730_v6  ;;  %859 = vmatpush1.bf16.msra.mxu1 %v1756_v26  ;;  %v1762_v30 = vld [vmem:[#allocation7 + $0x20] ss:$8 sps:$4 sm:$0xff]   ;;  %v1763_v31 = vld [vmem:[#allocation7 + $0x34] ss:$8 sps:$4 sm:$0xff]   ;;  %v1765_v32 = vld [vmem:[#allocation7 + $0x30] ss:$8 sps:$4 sm:$0xff]  }
  0x55   :  { %255 = vmatprep.subr.bf16.mxu0 %v1731_v7  ;;  %860 = vmatprep.subr.bf16.mxu1 %v1757_v27  ;;  %v1766_v33 = vld [vmem:[#allocation7 + $0x44] ss:$8 sps:$4 sm:$0xff]   ;;  %v1768_v34 = vld [vmem:[#allocation7 + $0x40] ss:$8 sps:$4 sm:$0xff]   ;;  %v1769_v35 = vld [vmem:[#allocation7 + $0x54] ss:$8 sps:$4 sm:$0xff]  }
  0x56   :  { %v1771_v36 = vld [vmem:[#allocation7 + $0x50] ss:$8 sps:$4 sm:$0xff]   ;;  %v1772_v37 = vld [vmem:[#allocation7 + $0x64] ss:$8 sps:$4 sm:$0xff]   ;;  %v1774_v38 = vld [vmem:[#allocation7 + $0x60] ss:$8 sps:$4 sm:$0xff]  }
  0x57   :  { %v1775_v39 = vld [vmem:[#allocation7 + $0x74] ss:$8 sps:$4 sm:$0xff]   ;;  %v1777_v40 = vld [vmem:[#allocation7 + $0x70] ss:$8 sps:$4 sm:$0xff]   ;;  %v1778_v41 = vld [vmem:[#allocation7 + $0x84] ss:$8 sps:$4 sm:$0xff]  }
  0x58   :  { %256 = vmatpush1.bf16.msra.mxu0 %v1733_v8  ;;  %861 = vmatpush1.bf16.msra.mxu1 %v1759_v28  ;;  %v1780_v42 = vld [vmem:[#allocation7 + $0x80] ss:$8 sps:$4 sm:$0xff]   ;;  %v1781_v43 = vld [vmem:[#allocation7 + $0x94] ss:$8 sps:$4 sm:$0xff]   ;;  %v1783_v44 = vld [vmem:[#allocation7 + $0x90] ss:$8 sps:$4 sm:$0xff]  }
  0x59   :  { %257 = vmatprep.subr.bf16.mxu0 %v1734_v9  ;;  %862 = vmatprep.subr.bf16.mxu1 %v1760_v29  ;;  %v1784_v45 = vld [vmem:[#allocation7 + $0xa4] ss:$8 sps:$4 sm:$0xff]   ;;  %v1786_v46 = vld [vmem:[#allocation7 + $0xa0] ss:$8 sps:$4 sm:$0xff]   ;;  %v1787_v47 = vld [vmem:[#allocation7 + $0xb4] ss:$8 sps:$4 sm:$0xff]  }
  0x5a   :  { %v1789_v48 = vld [vmem:[#allocation7 + $0xb0] ss:$8 sps:$4 sm:$0xff]   ;;  %v1790_v49 = vld [vmem:[#allocation7 + $0xc4] ss:$8 sps:$4 sm:$0xff]   ;;  %v1792_v50 = vld [vmem:[#allocation7 + $0xc0] ss:$8 sps:$4 sm:$0xff]  }
  0x5b   :  { %v1793_v51 = vld [vmem:[#allocation7 + $0xd4] ss:$8 sps:$4 sm:$0xff]   ;;  %v1795_v52 = vld [vmem:[#allocation7 + $0xd0] ss:$8 sps:$4 sm:$0xff]   ;;  %v1796_v53 = vld [vmem:[#allocation7 + $0xe4] ss:$8 sps:$4 sm:$0xff]  }
  0x5c   :  { %258 = vmatpush1.bf16.msra.mxu0 %v1736_v10  ;;  %863 = vmatpush1.bf16.msra.mxu1 %v1762_v30  ;;  %v1798_v54 = vld [vmem:[#allocation7 + $0xe0] ss:$8 sps:$4 sm:$0xff]   ;;  %v1799_v55 = vld [vmem:[#allocation7 + $0xf4] ss:$8 sps:$4 sm:$0xff]   ;;  %v1801_v56 = vld [vmem:[#allocation7 + $0xf0] ss:$8 sps:$4 sm:$0xff]  }
  0x5d   :  { %259 = vmatprep.subr.bf16.mxu0 %v1737_v11  ;;  %864 = vmatprep.subr.bf16.mxu1 %v1763_v31 }
  0x60   :  { %260 = vmatpush1.bf16.msra.mxu0 %v1739_v12  ;;  %865 = vmatpush1.bf16.msra.mxu1 %v1765_v32 }
  0x61   :  { %261 = vmatprep.subr.bf16.mxu0 %v1740_v13  ;;  %866 = vmatprep.subr.bf16.mxu1 %v1766_v33 }
  0x64   :  { %262 = vmatpush1.bf16.msra.mxu0 %v1742_v14  ;;  %867 = vmatpush1.bf16.msra.mxu1 %v1768_v34 }
  0x65   :  { %263 = vmatprep.subr.bf16.mxu0 %v1743_v15  ;;  %868 = vmatprep.subr.bf16.mxu1 %v1769_v35 }
  0x68   :  { %264 = vmatpush1.bf16.msra.mxu0 %v1745_v16  ;;  %869 = vmatpush1.bf16.msra.mxu1 %v1771_v36 }
  0x69   :  { %870 = vmatprep.subr.bf16.mxu1 %v1772_v37 }
  0x6b   :  { %282 = vmatmul.mubr.bf16.vlgmr.msra.gmra.mrb[0].mxu0 %v1746_v17 }
  0x6c   :  { %291 = vmatprep.mubr.bf16.mxu0 %v1984_v0  ;;  %871 = vmatpush1.bf16.msra.mxu1 %v1774_v38 }
  0x6d   :  { %872 = vmatprep.subr.bf16.mxu1 %v1775_v39 }
  0x70   :  { %873 = vmatpush1.bf16.msra.mxu1 %v1777_v40 }
  0x71   :  { %874 = vmatprep.subr.bf16.mxu1 %v1778_v41 }
  0x73   :  { %292 = vmatmul.mubr.bf16.gmra.mrb[4].mxu0 %v1747_v18 }
  0x74   :  { %301 = vmatprep.mubr.bf16.mxu0 %v1984_v0  ;;  %875 = vmatpush1.bf16.msra.mxu1 %v1780_v42 }
  0x75   :  { %876 = vmatprep.subr.bf16.mxu1 %v1781_v43 }
  0x78   :  { %877 = vmatpush1.bf16.msra.mxu1 %v1783_v44 }
  0x79   :  { %878 = vmatprep.subr.bf16.mxu1 %v1784_v45 }
  0x7b   :  { %302 = vmatmul.mubr.bf16.gmra.mrb[8].mxu0 %v1748_v19 }
  0x7c   :  { %311 = vmatprep.mubr.bf16.mxu0 %v1984_v0  ;;  %879 = vmatpush1.bf16.msra.mxu1 %v1786_v46 }
  0x7d   :  { %880 = vmatprep.subr.bf16.mxu1 %v1787_v47 }
  0x80   :  { %881 = vmatpush1.bf16.msra.mxu1 %v1789_v48 }
  0x81   :  { %882 = vmatprep.subr.bf16.mxu1 %v1790_v49 }
  0x83   :  { %312 = vmatmul.mubr.bf16.gmra.mrb[12].mxu0 %v1749_v20 }
  0x84   :  { %321 = vmatprep.mubr.bf16.mxu0 %v1984_v0  ;;  %883 = vmatpush1.bf16.msra.mxu1 %v1792_v50 }
  0x85   :  { %884 = vmatprep.subr.bf16.mxu1 %v1793_v51 }
  0x88   :  { %885 = vmatpush1.bf16.msra.mxu1 %v1795_v52 }
  0x89   :  { %886 = vmatprep.subr.bf16.mxu1 %v1796_v53 }
  0x8b   :  { %322 = vmatmul.mubr.bf16.gmra.mrb[16].mxu0 %v1750_v21 }
  0x8c   :  { %331 = vmatprep.mubr.bf16.mxu0 %v1984_v0  ;;  %887 = vmatpush1.bf16.msra.mxu1 %v1798_v54 }
  0x8d   :  { %888 = vmatprep.subr.bf16.mxu1 %v1799_v55 }
  0x90   :  { %889 = vmatpush1.bf16.msra.mxu1 %v1801_v56 }
  0x93   :  { %332 = vmatmul.mubr.bf16.gmra.mrb[20].mxu0 %v1751_v22 }
  0x94   :  { %341 = vmatprep.mubr.bf16.mxu0 %v1984_v0 }
  0x9b   :  { %342 = vmatmul.mubr.bf16.gmra.mrb[24].mxu0 %v1752_v23 }
  0x9c   :  { %351 = vmatprep.mubr.bf16.mxu0 %v1984_v0 }
  0xa3   :  { %352 = vmatmul.mubr.bf16.gmra.mrb[28].mxu0 %v1753_v24 }
 0x13e   :  { %v2104_v57 = vpop.f32.mrb[0].mxu0 }
 0x13f   :  { %v2106_v58 = vpop.f32.mrb[1].mxu0  ;;  %v406_v60 = vmul.f32 %v2104_v57, %v2104_v57 }
 0x140   :  { %v2108_v59 = vpop.f32.mrb[2].mxu0  ;;  %v407_v0 = vmul.f32 %v2106_v58, %v2106_v58 }
 0x141   :  { %v362_v61 = vadd.f32 %v2108_v59, %v2104_v57  ;;  %v408_v62 = vmul.f32 %v2108_v59, %v2108_v59  ;;  %v2116_v63 = vpop.f32.mrb[3].mxu0 }
 0x142   :  { %v383_v1 = vadd.f32 %v2116_v63, %v2106_v58  ;;  %v409_v2 = vmul.f32 %v2116_v63, %v2116_v63 }
 0x143   :  { %v438_v3 = vadd.f32 %v408_v62, %v406_v60 }
 0x144   :  { %v459_v4 = vadd.f32 %v409_v2, %v407_v0 }
 0x146   :  { %v2124_v5 = vpop.f32.mrb[4].mxu0 }
 0x147   :  { %v363_v6 = vadd.f32 %v362_v61, %v2124_v5  ;;  %v410_v7 = vmul.f32 %v2124_v5, %v2124_v5  ;;  %v2129_v8 = vpop.f32.mrb[5].mxu0 }
 0x148   :  { %v384_v9 = vadd.f32 %v383_v1, %v2129_v8  ;;  %v411_v10 = vmul.f32 %v2129_v8, %v2129_v8  ;;  %v2134_v11 = vpop.f32.mrb[6].mxu0 }
 0x149   :  { %v439_v12 = vadd.f32 %v438_v3, %v410_v7  ;;  %v364_v13 = vadd.f32 %v363_v6, %v2134_v11  ;;  %v412_v14 = vmul.f32 %v2134_v11, %v2134_v11  ;;  %v2139_v15 = vpop.f32.mrb[7].mxu0 }
 0x14a   :  { %v460_v16 = vadd.f32 %v459_v4, %v411_v10  ;;  %v385_v17 = vadd.f32 %v384_v9, %v2139_v15  ;;  %v413_v18 = vmul.f32 %v2139_v15, %v2139_v15 }
 0x14b   :  { %v440_v19 = vadd.f32 %v439_v12, %v412_v14 }
 0x14c   :  { %v461_v20 = vadd.f32 %v460_v16, %v413_v18 }
 0x14e   :  { %v2144_v21 = vpop.f32.mrb[8].mxu0 }
 0x14f   :  { %v365_v22 = vadd.f32 %v364_v13, %v2144_v21  ;;  %v414_v23 = vmul.f32 %v2144_v21, %v2144_v21  ;;  %v2149_v24 = vpop.f32.mrb[9].mxu0 }
 0x150   :  { %v386_v25 = vadd.f32 %v385_v17, %v2149_v24  ;;  %v415_v26 = vmul.f32 %v2149_v24, %v2149_v24  ;;  %v2154_v27 = vpop.f32.mrb[10].mxu0 }
 0x151   :  { %v441_v28 = vadd.f32 %v440_v19, %v414_v23  ;;  %v366_v29 = vadd.f32 %v365_v22, %v2154_v27  ;;  %v416_v30 = vmul.f32 %v2154_v27, %v2154_v27  ;;  %v2159_v31 = vpop.f32.mrb[11].mxu0 }
 0x152   :  { %v462_v32 = vadd.f32 %v461_v20, %v415_v26  ;;  %v387_v33 = vadd.f32 %v386_v25, %v2159_v31  ;;  %v417_v34 = vmul.f32 %v2159_v31, %v2159_v31 }
 0x153   :  { %v442_v35 = vadd.f32 %v441_v28, %v416_v30 }
 0x154   :  { %v463_v36 = vadd.f32 %v462_v32, %v417_v34 }
 0x156   :  { %v2164_v37 = vpop.f32.mrb[12].mxu0 }
 0x157   :  { %v367_v38 = vadd.f32 %v366_v29, %v2164_v37  ;;  %v418_v39 = vmul.f32 %v2164_v37, %v2164_v37  ;;  %v2169_v40 = vpop.f32.mrb[13].mxu0 }
 0x158   :  { %v388_v41 = vadd.f32 %v387_v33, %v2169_v40  ;;  %v419_v42 = vmul.f32 %v2169_v40, %v2169_v40  ;;  %v2174_v43 = vpop.f32.mrb[14].mxu0 }
 0x159   :  { %v443_v44 = vadd.f32 %v442_v35, %v418_v39  ;;  %v368_v45 = vadd.f32 %v367_v38, %v2174_v43  ;;  %v420_v46 = vmul.f32 %v2174_v43, %v2174_v43  ;;  %v2179_v47 = vpop.f32.mrb[15].mxu0 }
 0x15a   :  { %v464_v48 = vadd.f32 %v463_v36, %v419_v42  ;;  %v389_v49 = vadd.f32 %v388_v41, %v2179_v47  ;;  %v421_v50 = vmul.f32 %v2179_v47, %v2179_v47 }
 0x15b   :  { %v444_v51 = vadd.f32 %v443_v44, %v420_v46 }
 0x15c   :  { %v465_v52 = vadd.f32 %v464_v48, %v421_v50 }
 0x15e   :  { %v2184_v53 = vpop.f32.mrb[16].mxu0 }
 0x15f   :  { %v369_v54 = vadd.f32 %v368_v45, %v2184_v53  ;;  %v422_v55 = vmul.f32 %v2184_v53, %v2184_v53  ;;  %v2189_v56 = vpop.f32.mrb[17].mxu0 }
 0x160   :  { %v390_v60 = vadd.f32 %v389_v49, %v2189_v56  ;;  %v423_v61 = vmul.f32 %v2189_v56, %v2189_v56  ;;  %v2194_v62 = vpop.f32.mrb[18].mxu0 }
 0x161   :  { %v445_v0 = vadd.f32 %v444_v51, %v422_v55  ;;  %v370_v1 = vadd.f32 %v369_v54, %v2194_v62  ;;  %v424_v2 = vmul.f32 %v2194_v62, %v2194_v62  ;;  %v2199_v3 = vpop.f32.mrb[19].mxu0 }
 0x162   :  { %v466_v4 = vadd.f32 %v465_v52, %v423_v61  ;;  %v391_v6 = vadd.f32 %v390_v60, %v2199_v3  ;;  %v425_v7 = vmul.f32 %v2199_v3, %v2199_v3 }
 0x163   :  { %v446_v9 = vadd.f32 %v445_v0, %v424_v2 }
 0x164   :  { %v467_v10 = vadd.f32 %v466_v4, %v425_v7 }
 0x166   :  { %v2204_v12 = vpop.f32.mrb[20].mxu0 }
 0x167   :  { %v371_v13 = vadd.f32 %v370_v1, %v2204_v12  ;;  %v426_v14 = vmul.f32 %v2204_v12, %v2204_v12  ;;  %v2209_v16 = vpop.f32.mrb[21].mxu0 }
 0x168   :  { %v392_v17 = vadd.f32 %v391_v6, %v2209_v16  ;;  %v427_v18 = vmul.f32 %v2209_v16, %v2209_v16  ;;  %v2214_v19 = vpop.f32.mrb[22].mxu0 }
 0x169   :  { %v447_v20 = vadd.f32 %v446_v9, %v426_v14  ;;  %v372_v22 = vadd.f32 %v371_v13, %v2214_v19  ;;  %v428_v23 = vmul.f32 %v2214_v19, %v2214_v19  ;;  %v2219_v25 = vpop.f32.mrb[23].mxu0 }
 0x16a   :  { %v468_v26 = vadd.f32 %v467_v10, %v427_v18  ;;  %v393_v28 = vadd.f32 %v392_v17, %v2219_v25  ;;  %v429_v29 = vmul.f32 %v2219_v25, %v2219_v25 }
 0x16b   :  { %v448_v30 = vadd.f32 %v447_v20, %v428_v23 }
 0x16c   :  { %v469_v32 = vadd.f32 %v468_v26, %v429_v29 }
 0x16e   :  { %v2224_v33 = vpop.f32.mrb[24].mxu0 }
 0x16f   :  { %v373_v34 = vadd.f32 %v372_v22, %v2224_v33  ;;  %v430_v35 = vmul.f32 %v2224_v33, %v2224_v33  ;;  %v2229_v36 = vpop.f32.mrb[25].mxu0 }
 0x170   :  { %v394_v38 = vadd.f32 %v393_v28, %v2229_v36  ;;  %v431_v39 = vmul.f32 %v2229_v36, %v2229_v36  ;;  %v2234_v41 = vpop.f32.mrb[26].mxu0 }
 0x171   :  { %v449_v42 = vadd.f32 %v448_v30, %v430_v35  ;;  %v374_v44 = vadd.f32 %v373_v34, %v2234_v41  ;;  %v432_v45 = vmul.f32 %v2234_v41, %v2234_v41  ;;  %v2239_v46 = vpop.f32.mrb[27].mxu0 }
 0x172   :  { %v470_v48 = vadd.f32 %v469_v32, %v431_v39  ;;  %v395_v49 = vadd.f32 %v394_v38, %v2239_v46  ;;  %v433_v50 = vmul.f32 %v2239_v46, %v2239_v46 }
 0x173   :  { %v450_v51 = vadd.f32 %v449_v42, %v432_v45 }
 0x174   :  { %v471_v52 = vadd.f32 %v470_v48, %v433_v50 }
 0x176   :  { %v2244_v54 = vpop.f32.mrb[28].mxu0 }
 0x177   :  { %v375_v55 = vadd.f32 %v374_v44, %v2244_v54  ;;  %v434_v60 = vmul.f32 %v2244_v54, %v2244_v54  ;;  %v2249_v61 = vpop.f32.mrb[29].mxu0 }
 0x178   :  { %v396_v0 = vadd.f32 %v395_v49, %v2249_v61  ;;  %v435_v1 = vmul.f32 %v2249_v61, %v2249_v61  ;;  %v2254_v2 = vpop.f32.mrb[30].mxu0 }
 0x179   :  { %v451_v4 = vadd.f32 %v450_v51, %v434_v60  ;;  %v376_v6 = vadd.f32 %v375_v55, %v2254_v2  ;;  %v436_v7 = vmul.f32 %v2254_v2, %v2254_v2  ;;  %v359_v9 = vpop.f32.mrb[31].mxu0 }
 0x17a   :  { %v472_v10 = vadd.f32 %v471_v52, %v435_v1  ;;  %v397_v13 = vadd.f32 %v396_v0, %v359_v9  ;;  %v437_v14 = vmul.f32 %v359_v9, %v359_v9 }
 0x17b   :  { %v377_v17 = vrot.slane %v376_v6, 4  ;;  %v452_v18 = vadd.f32 %v451_v4, %v436_v7 }
 0x17c   :  { %v398_v20 = vrot.slane %v397_v13, 4  ;;  %v473_v22 = vadd.f32 %v472_v10, %v437_v14 }
 0x17d   :  { %v378_v23 = vadd.f32 %v377_v17, %v376_v6  ;;  %v453_v26 = vrot.slane %v452_v18, 4 }
 0x17e   :  { %v399_v28 = vadd.f32 %v398_v20, %v397_v13  ;;  %v474_v29 = vrot.slane %v473_v22, 4 }
 0x17f   :  { %v379_v30 = vrot.slane %v378_v23, 2  ;;  %v454_v32 = vadd.f32 %v453_v26, %v452_v18 }
 0x180   :  { %v400_v34 = vrot.slane %v399_v28, 2  ;;  %v475_v35 = vadd.f32 %v474_v29, %v473_v22 }
 0x181   :  { %v380_v38 = vadd.f32 %v379_v30, %v378_v23  ;;  %v455_v39 = vrot.slane %v454_v32, 2  ;;  %v1985_v23 = vmov 1966171168  }
 0x182   :  { %v401_v42 = vadd.f32 %v400_v34, %v399_v28  ;;  %v476_v44 = vrot.slane %v475_v35, 2  ;;  %v495_v26 = vunpack.c.l.s4 %v1985_v23  ;;  %v497_v28 = vlaneseq }
 0x183   :  { %v381_v45 = vrot.slane %v380_v38, 1  ;;  %v456_v48 = vadd.f32 %v455_v39, %v454_v32 }
 0x184   :  { %v402_v49 = vrot.slane %v401_v42, 1  ;;  %v477_v50 = vadd.f32 %v476_v44, %v475_v35  ;;  %v496_v29 = vunpack.c.0.s8 %v495_v26  ;;  %v498_v30 = vshrl.u32 %v497_v28, 7 }
 0x185   :  { %v382_v51 = vadd.f32 %v381_v45, %v380_v38  ;;  %v457_v52 = vrot.slane %v456_v48, 1 }
 0x186   :  { %v403_v55 = vadd.f32 %v402_v49, %v401_v42  ;;  %v478_v60 = vrot.slane %v477_v50, 1  ;;  %v2259_v34 = vsub.s32 %v496_v29, %v498_v30  ;;  %v486_v42 = vld [vmem:[%s2698_s2] sm:$0x3]  ;;  %v2266_v45 = vsub.s32 0, %v498_v30 }
 0x187   :  { %v404_v0 = vmul.f32 0.0078125, %v382_v51  ;;  %v458_v1 = vadd.f32 %v457_v52, %v456_v48  ;;  %v2268_v48 = vsub.s32 1, %v498_v30 }
 0x188   :  { %v405_v4 = vmul.f32 0.0078125, %v403_v55  ;;  %v479_v6 = vadd.f32 %v478_v60, %v477_v50 }
 0x189   :  { %v480_v7 = vmul.f32 0.0078125, %v458_v1  ;;  %v482_v10 = vmul.f32 %v404_v0, %v404_v0 }
 0x18a   :  { %v481_v13 = vmul.f32 0.0078125, %v479_v6  ;;  %v483_v14 = vmul.f32 %v405_v4, %v405_v4 }
 0x18b   :  { %v484_v17 = vsub.f32 %v480_v7, %v482_v10 }
 0x18c   :  { %v485_v18 = vsub.f32 %v481_v13, %v483_v14 }
 0x18d   :  { %v487_v20 = vadd.f32 1e-05, %v484_v17 }
 0x18e   :  { %v488_v22 = vadd.f32 1e-05, %v485_v18 }
 0x18f   :  { %1818 = vrsqrt.f32 %v487_v20 }
 0x190   :  { %1820 = vrsqrt.f32 %v488_v22 }
 0x199   :  { %v1819_v32 = vpop.eup %1818 }
 0x19a   :  { %v1821_v35 = vpop.eup %1820 }
 0x19b   :  { %v493_v38 = vcombine.low %v1819_v32, %v1821_v35 }
 0x19d   :  { %v500_v39 = vrot.slane %v493_v38, %v2259_v34 }
 0x19f   :  { %v507_v44 = vrot.slane %v500_v39, %v2259_v34 }
 0x1a1   :  { %v509_v49 = vmul.f32 %v507_v44, %v486_v42 }
 0x1a3   :  { %v515_v50 = vrot.slane %v509_v49, %v2266_v45  ;;  %v519_v51 = vrot.slane %v509_v49, %v2268_v48 }
 0x1a5   :  { %v522_v52 = vmul.f32 %v515_v50, %v404_v0  ;;  %v523_v55 = vmul.f32 %v519_v51, %v405_v4  ;;  %v574_v60 = vmul.f32 %v519_v51, %v359_v9  ;;  %v544_v1 = vmul.f32 %v519_v51, %v2106_v58 }
 0x1a6   :  { %v546_v6 = vmul.f32 %v519_v51, %v2116_v63  ;;  %v543_v7 = vmul.f32 %v515_v50, %v2104_v57  ;;  %v545_v10 = vmul.f32 %v515_v50, %v2108_v59  ;;  %v548_v13 = vmul.f32 %v519_v51, %v2129_v8 }
 0x1a7   :  { %v526_v14 = vcombine.low %v522_v52, %v523_v55  ;;  %v550_v17 = vmul.f32 %v519_v51, %v2139_v15  ;;  %v547_v18 = vmul.f32 %v515_v50, %v2124_v5  ;;  %v549_v20 = vmul.f32 %v515_v50, %v2134_v11  ;;  %v510_v5 = vld [vmem:[%s2699_s3] sm:$0x3] }
 0x1a8   :  { %v552_v0 = vmul.f32 %v519_v51, %v2149_v24  ;;  %v554_v9 = vmul.f32 %v519_v51, %v2159_v31  ;;  %v551_v58 = vmul.f32 %v515_v50, %v2144_v21  ;;  %v553_v63 = vmul.f32 %v515_v50, %v2154_v27 }
 0x1a9   :  { %v533_v57 = vrot.slane %v526_v14, %v2259_v34  ;;  %v556_v59 = vmul.f32 %v519_v51, %v2169_v40  ;;  %v558_v8 = vmul.f32 %v519_v51, %v2179_v47  ;;  %v555_v15 = vmul.f32 %v515_v50, %v2164_v37 }
 0x1aa   :  { %v557_v11 = vmul.f32 %v515_v50, %v2174_v43  ;;  %v560_v24 = vmul.f32 %v519_v51, %v2189_v56  ;;  %v562_v21 = vmul.f32 %v519_v51, %v2199_v3  ;;  %v559_v27 = vmul.f32 %v515_v50, %v2184_v53 }
 0x1ab   :  { %v540_v31 = vrot.slane %v533_v57, %v2259_v34  ;;  %v561_v40 = vmul.f32 %v515_v50, %v2194_v62  ;;  %v2298_v47 = vmul.f32 %v519_v51, %v2209_v16  ;;  %v2301_v37 = vmul.f32 %v519_v51, %v2219_v25 }
 0x1ac   :  { %v2304_v4 = vmul.f32 %v515_v50, %v2204_v12  ;;  %v2307_v43 = vmul.f32 %v515_v50, %v2214_v19  ;;  %v2310_v56 = vmul.f32 %v519_v51, %v2229_v36  ;;  %v2313_v53 = vmul.f32 %v519_v51, %v2239_v46 }
 0x1ad   :  { %v542_v3 = vsub.f32 %v510_v5, %v540_v31  ;;  %v2316_v62 = vmul.f32 %v515_v50, %v2224_v33  ;;  %v2319_v16 = vmul.f32 %v515_v50, %v2234_v41  ;;  %v2322_v25 = vmul.f32 %v519_v51, %v2249_v61 }
 0x1ae   :  { %v2325_v12 = vmul.f32 %v515_v50, %v2244_v54  ;;  %v2328_v19 = vmul.f32 %v515_v50, %v2254_v2 }
 0x1af   :  { %v2331_v36 = vrot.slane %v542_v3, %v2266_v45  ;;  %v2334_v46 = vrot.slane %v542_v3, %v2268_v48 }
 0x1b1   :  { %v2337_v33 = vadd.f32 %v2334_v46, %v574_v60  ;;  %v587_v41 = vadd.f32 %v2334_v46, %v544_v1  ;;  %v589_v61 = vadd.f32 %v2334_v46, %v546_v6  ;;  %v586_v22 = vadd.f32 %v2331_v36, %v543_v7 }
 0x1b2   :  { %v588_v54 = vadd.f32 %v2331_v36, %v545_v10  ;;  %v591_v2 = vadd.f32 %v2334_v46, %v548_v13  ;;  %v593_v23 = vadd.f32 %v2334_v46, %v550_v17  ;;  %v590_v26 = vadd.f32 %v2331_v36, %v547_v18 }
 0x1b3   :  { %v619_v28 = vmax.f32 %v587_v41, 0.0  ;;  %v621_v29 = vmax.f32 %v589_v61, 0.0  ;;  %v618_v30 = vmax.f32 %v586_v22, 0.0  ;;  %v592_v32 = vadd.f32 %v2331_v36, %v549_v20 }
 0x1b4   :  { %v620_v35 = vmax.f32 %v588_v54, 0.0  ;;  %v623_v38 = vmax.f32 %v591_v2, 0.0  ;;  %v625_v39 = vmax.f32 %v593_v23, 0.0  ;;  %v622_v42 = vmax.f32 %v590_v26, 0.0 }
 0x1b5   :  { %v651_v44 = vpack.c.bf16 %v621_v29, %v619_v28  ;;  %v624_v49 = vmax.f32 %v592_v32, 0.0  ;;  %v595_v50 = vadd.f32 %v2334_v46, %v552_v0  ;;  %v597_v51 = vadd.f32 %v2334_v46, %v554_v9 }
 0x1b6   :  { %v650_v52 = vpack.c.bf16 %v620_v35, %v618_v30  ;;  %v653_v55 = vpack.c.bf16 %v625_v39, %v623_v38  ;;  %v594_v60 = vadd.f32 %v2331_v36, %v551_v58  ;;  %v596_v1 = vadd.f32 %v2331_v36, %v553_v63 }
 0x1b7   :  { %890 = vmatprep.mubr.bf16.mxu1 %v651_v44  ;;  %v652_v6 = vpack.c.bf16 %v624_v49, %v622_v42  ;;  %v627_v7 = vmax.f32 %v595_v50, 0.0  ;;  %v629_v10 = vmax.f32 %v597_v51, 0.0  ;;  %v599_v13 = vadd.f32 %v2334_v46, %v556_v59 }
 0x1b8   :  { %891 = vmatmul.mubr.bf16.vlgmr.msra.gmra.mrb[0].mxu1 %v650_v52  ;;  %v626_v14 = vmax.f32 %v594_v60, 0.0  ;;  %v628_v17 = vmax.f32 %v596_v1, 0.0  ;;  %v601_v18 = vadd.f32 %v2334_v46, %v558_v8  ;;  %v598_v20 = vadd.f32 %v2331_v36, %v555_v15 }
 0x1b9   :  { %900 = vmatprep.mubr.bf16.mxu1 %v653_v55  ;;  %v655_v0 = vpack.c.bf16 %v629_v10, %v627_v7  ;;  %v631_v9 = vmax.f32 %v599_v13, 0.0  ;;  %v600_v58 = vadd.f32 %v2331_v36, %v557_v11  ;;  %v603_v63 = vadd.f32 %v2334_v46, %v560_v24  ;;  %v1808_v7 = vld [vmem:[#allocation8 + $0x58] sm:$0xff]   ;;  %v1810_v13 = vld [vmem:[#allocation8 + $0x60] sm:$0xff]  }
 0x1ba   :  { %v654_v57 = vpack.c.bf16 %v628_v17, %v626_v14  ;;  %v633_v5 = vmax.f32 %v601_v18, 0.0  ;;  %v630_v31 = vmax.f32 %v598_v20, 0.0  ;;  %v605_v3 = vadd.f32 %v2334_v46, %v562_v21  ;;  %v1809_v10 = vld [vmem:[#allocation8 + $0x18] sm:$0xff]   ;;  %v1811_v14 = vld [vmem:[#allocation8 + $0x20] sm:$0xff]   ;;  %v1812_v17 = vld [vmem:[#allocation8 + $0x68] sm:$0xff]  }
 0x1bb   :  { %v632_v59 = vmax.f32 %v600_v58, 0.0  ;;  %v635_v41 = vmax.f32 %v603_v63, 0.0  ;;  %v602_v61 = vadd.f32 %v2331_v36, %v559_v27  ;;  %v604_v8 = vadd.f32 %v2331_v36, %v561_v40  ;;  %v1813_v18 = vld [vmem:[#allocation8 + $0x28] sm:$0xff]   ;;  %v1814_v20 = vld [vmem:[#allocation8 + $0x70] sm:$0xff]  }
 0x1bc   :  { %v657_v22 = vpack.c.bf16 %v633_v5, %v631_v9  ;;  %v637_v15 = vmax.f32 %v605_v3, 0.0  ;;  %v607_v54 = vadd.f32 %v2334_v46, %v2298_v47  ;;  %v609_v11 = vadd.f32 %v2334_v46, %v2301_v37  ;;  %v1815_v58 = vld [vmem:[#allocation8 + $0x30] sm:$0xff]  }
 0x1bd   :  { %v656_v24 = vpack.c.bf16 %v632_v59, %v630_v31  ;;  %v634_v2 = vmax.f32 %v602_v61, 0.0  ;;  %v636_v23 = vmax.f32 %v604_v8, 0.0  ;;  %v606_v21 = vadd.f32 %v2331_v36, %v2304_v4 }
 0x1be   :  { %v659_v26 = vpack.c.bf16 %v637_v15, %v635_v41  ;;  %v639_v28 = vmax.f32 %v607_v54, 0.0  ;;  %v641_v29 = vmax.f32 %v609_v11, 0.0  ;;  %v608_v27 = vadd.f32 %v2331_v36, %v2307_v43  ;;  %v1817_v15 = vld [vmem:[#allocation8 + $0x38] sm:$0xff]  }
 0x1bf   :  { %v658_v40 = vpack.c.bf16 %v636_v23, %v634_v2  ;;  %v638_v30 = vmax.f32 %v606_v21, 0.0  ;;  %v611_v47 = vadd.f32 %v2334_v46, %v2310_v56  ;;  %v613_v37 = vadd.f32 %v2334_v46, %v2313_v53 }
 0x1c0   :  { %901 = vmatmul.mubr.bf16.gmra.mrb[4].mxu1 %v652_v6  ;;  %v661_v32 = vpack.c.bf16 %v641_v29, %v639_v28  ;;  %v640_v35 = vmax.f32 %v608_v27, 0.0  ;;  %v610_v4 = vadd.f32 %v2331_v36, %v2316_v62  ;;  %v612_v38 = vadd.f32 %v2331_v36, %v2319_v16 }
 0x1c1   :  { %910 = vmatprep.mubr.bf16.mxu1 %v655_v0  ;;  %v643_v39 = vmax.f32 %v611_v47, 0.0  ;;  %v645_v43 = vmax.f32 %v613_v37, 0.0  ;;  %v615_v42 = vadd.f32 %v2334_v46, %v2322_v25  ;;  %v649_v56 = vmax.f32 %v2337_v33, 0.0  ;;  %v1802_v25 = vld [vmem:[#allocation8 + $0x40] sm:$0xff]   ;;  %v1806_v46 = vld [vmem:[#allocation8 + $0x50] sm:$0xff]  }
 0x1c2   :  { %v660_v44 = vpack.c.bf16 %v640_v35, %v638_v30  ;;  %v642_v49 = vmax.f32 %v610_v4, 0.0  ;;  %v644_v53 = vmax.f32 %v612_v38, 0.0  ;;  %v614_v50 = vadd.f32 %v2331_v36, %v2325_v12  ;;  %1631 = vmatprep.subr.bf16.mxu0 %v1802_v25  ;;  %1695 = vmatprep.subr.bf16.mxu1 %v1802_v25  ;;  %v1803_v12 = vld [vmem:[#allocation8] sm:$0xff]   ;;  %v1807_v33 = vld [vmem:[#allocation8 + $0x10] sm:$0xff]  }
 0x1c3   :  { %v663_v51 = vpack.c.bf16 %v645_v43, %v643_v39  ;;  %v647_v52 = vmax.f32 %v615_v42, 0.0  ;;  %v616_v62 = vadd.f32 %v2331_v36, %v2328_v19  ;;  %1632 = vmatpush3.bf16.msra.mxu0 %v1803_v12  ;;  %1703 = vmatpush3.bf16.msra.mxu1 %v1803_v12  ;;  %v1804_v19 = vld [vmem:[#allocation8 + $0x48] sm:$0xff]  }
 0x1c4   :  { %v662_v16 = vpack.c.bf16 %v644_v53, %v642_v49  ;;  %v646_v55 = vmax.f32 %v614_v50, 0.0  ;;  %v1805_v36 = vld [vmem:[#allocation8 + $0x8] sm:$0xff]   ;;  %1633 = vmatprep.subr.bf16.mxu0 %v1804_v19  ;;  %1696 = vmatprep.subr.bf16.mxu1 %v1804_v19 }
 0x1c5   :  { %v665_v60 = vpack.c.bf16 %v649_v56, %v647_v52  ;;  %v648_v1 = vmax.f32 %v616_v62, 0.0 }
 0x1c7   :  { %v664_v6 = vpack.c.bf16 %v648_v1, %v646_v55  ;;  %1634 = vmatpush3.bf16.msra.mxu0 %v1805_v36  ;;  %1704 = vmatpush3.bf16.msra.mxu1 %v1805_v36 }
 0x1c8   :  { %911 = vmatmul.mubr.bf16.gmra.mrb[8].mxu1 %v654_v57  ;;  %1635 = vmatprep.subr.bf16.mxu0 %v1806_v46  ;;  %v1816_v57 = vld [vmem:[#allocation8 + $0x78] sm:$0xff]  }
 0x1c9   :  { %920 = vmatprep.mubr.bf16.mxu1 %v657_v22  ;;  %1697 = vmatprep.subr.bf16.mxu1 %v1806_v46 }
 0x1cb   :  { %1636 = vmatpush3.bf16.msra.mxu0 %v1807_v33  ;;  %1705 = vmatpush3.bf16.msra.mxu1 %v1807_v33 }
 0x1cc   :  { %1637 = vmatprep.subr.bf16.mxu0 %v1808_v7  ;;  %1698 = vmatprep.subr.bf16.mxu1 %v1808_v7 }
 0x1cf   :  { %1638 = vmatpush3.bf16.msra.mxu0 %v1809_v10  ;;  %1706 = vmatpush3.bf16.msra.mxu1 %v1809_v10 }
 0x1d0   :  { %921 = vmatmul.mubr.bf16.gmra.mrb[12].mxu1 %v656_v24  ;;  %1639 = vmatprep.subr.bf16.mxu0 %v1810_v13 }
 0x1d1   :  { %930 = vmatprep.mubr.bf16.mxu1 %v659_v26  ;;  %1699 = vmatprep.subr.bf16.mxu1 %v1810_v13 }
 0x1d3   :  { %1640 = vmatpush3.bf16.msra.mxu0 %v1811_v14  ;;  %1707 = vmatpush3.bf16.msra.mxu1 %v1811_v14 }
 0x1d4   :  { %1641 = vmatprep.subr.bf16.mxu0 %v1812_v17  ;;  %1700 = vmatprep.subr.bf16.mxu1 %v1812_v17 }
 0x1d7   :  { %1642 = vmatpush3.bf16.msra.mxu0 %v1813_v18  ;;  %1708 = vmatpush3.bf16.msra.mxu1 %v1813_v18 }
 0x1d8   :  { %931 = vmatmul.mubr.bf16.gmra.mrb[16].mxu1 %v658_v40  ;;  %1643 = vmatprep.subr.bf16.mxu0 %v1814_v20 }
 0x1d9   :  { %940 = vmatprep.mubr.bf16.mxu1 %v661_v32  ;;  %1701 = vmatprep.subr.bf16.mxu1 %v1814_v20 }
 0x1db   :  { %1644 = vmatpush3.bf16.msra.mxu0 %v1815_v58  ;;  %1709 = vmatpush3.bf16.msra.mxu1 %v1815_v58 }
 0x1dc   :  { %1645 = vmatprep.subr.bf16.mxu0 %v1816_v57  ;;  %1702 = vmatprep.subr.bf16.mxu1 %v1816_v57 }
 0x1df   :  { %1646 = vmatpush3.bf16.msra.mxu0 %v1817_v15  ;;  %1710 = vmatpush3.bf16.msra.mxu1 %v1817_v15 }
 0x1e0   :  { %941 = vmatmul.mubr.bf16.gmra.mrb[20].mxu1 %v660_v44 }
 0x1e1   :  { %950 = vmatprep.mubr.bf16.mxu1 %v663_v51 }
 0x1e8   :  { %951 = vmatmul.mubr.bf16.gmra.mrb[24].mxu1 %v662_v16 }
 0x1e9   :  { %960 = vmatprep.mubr.bf16.mxu1 %v665_v60 }
 0x1f0   :  { %961 = vmatmul.mubr.bf16.gmra.mrb[28].mxu1 %v664_v6 }
 0x28b   :  { %v2382_v0 = vpop.f32.mrb[0].mxu1 }
 0x28c   :  { %v2384_v9 = vpop.f32.mrb[1].mxu1  ;;  %v1015_v5 = vmul.f32 %v2382_v0, %v2382_v0 }
 0x28d   :  { %v2386_v63 = vpop.f32.mrb[2].mxu1  ;;  %v1016_v41 = vmul.f32 %v2384_v9, %v2384_v9 }
 0x28e   :  { %v971_v31 = vadd.f32 %v2386_v63, %v2382_v0  ;;  %v1017_v3 = vmul.f32 %v2386_v63, %v2386_v63  ;;  %v2394_v59 = vpop.f32.mrb[3].mxu1 }
 0x28f   :  { %v992_v61 = vadd.f32 %v2394_v59, %v2384_v9  ;;  %v1018_v8 = vmul.f32 %v2394_v59, %v2394_v59 }
 0x290   :  { %v1047_v22 = vadd.f32 %v1017_v3, %v1015_v5 }
 0x291   :  { %v1068_v54 = vadd.f32 %v1018_v8, %v1016_v41 }
 0x293   :  { %v2402_v11 = vpop.f32.mrb[4].mxu1 }
 0x294   :  { %v972_v24 = vadd.f32 %v971_v31, %v2402_v11  ;;  %v1019_v2 = vmul.f32 %v2402_v11, %v2402_v11  ;;  %v2407_v23 = vpop.f32.mrb[5].mxu1 }
 0x295   :  { %v993_v21 = vadd.f32 %v992_v61, %v2407_v23  ;;  %v1020_v26 = vmul.f32 %v2407_v23, %v2407_v23  ;;  %v2412_v28 = vpop.f32.mrb[6].mxu1 }
 0x296   :  { %v1048_v29 = vadd.f32 %v1047_v22, %v1019_v2  ;;  %v973_v27 = vadd.f32 %v972_v24, %v2412_v28  ;;  %v1021_v40 = vmul.f32 %v2412_v28, %v2412_v28  ;;  %v2417_v30 = vpop.f32.mrb[7].mxu1 }
 0x297   :  { %v1069_v47 = vadd.f32 %v1068_v54, %v1020_v26  ;;  %v994_v37 = vadd.f32 %v993_v21, %v2417_v30  ;;  %v1022_v32 = vmul.f32 %v2417_v30, %v2417_v30 }
 0x298   :  { %v1049_v35 = vadd.f32 %v1048_v29, %v1021_v40 }
 0x299   :  { %v1070_v4 = vadd.f32 %v1069_v47, %v1022_v32 }
 0x29b   :  { %v2422_v38 = vpop.f32.mrb[8].mxu1 }
 0x29c   :  { %v974_v39 = vadd.f32 %v973_v27, %v2422_v38  ;;  %v1023_v43 = vmul.f32 %v2422_v38, %v2422_v38  ;;  %v2427_v42 = vpop.f32.mrb[9].mxu1 }
 0x29d   :  { %v995_v56 = vadd.f32 %v994_v37, %v2427_v42  ;;  %v1024_v44 = vmul.f32 %v2427_v42, %v2427_v42  ;;  %v2432_v49 = vpop.f32.mrb[10].mxu1 }
 0x29e   :  { %v1050_v53 = vadd.f32 %v1049_v35, %v1023_v43  ;;  %v975_v50 = vadd.f32 %v974_v39, %v2432_v49  ;;  %v1025_v51 = vmul.f32 %v2432_v49, %v2432_v49  ;;  %v2437_v52 = vpop.f32.mrb[11].mxu1 }
 0x29f   :  { %v1071_v62 = vadd.f32 %v1070_v4, %v1024_v44  ;;  %v996_v16 = vadd.f32 %v995_v56, %v2437_v52  ;;  %v1026_v55 = vmul.f32 %v2437_v52, %v2437_v52 }
 0x2a0   :  { %v1051_v60 = vadd.f32 %v1050_v53, %v1025_v51 }
 0x2a1   :  { %v1072_v1 = vadd.f32 %v1071_v62, %v1026_v55 }
 0x2a3   :  { %v2442_v6 = vpop.f32.mrb[12].mxu1 }
 0x2a4   :  { %v976_v25 = vadd.f32 %v975_v50, %v2442_v6  ;;  %v1027_v12 = vmul.f32 %v2442_v6, %v2442_v6  ;;  %v2447_v19 = vpop.f32.mrb[13].mxu1 }
 0x2a5   :  { %v997_v36 = vadd.f32 %v996_v16, %v2447_v19  ;;  %v1028_v46 = vmul.f32 %v2447_v19, %v2447_v19  ;;  %v2452_v33 = vpop.f32.mrb[14].mxu1 }
 0x2a6   :  { %v1052_v7 = vadd.f32 %v1051_v60, %v1027_v12  ;;  %v977_v10 = vadd.f32 %v976_v25, %v2452_v33  ;;  %v1029_v13 = vmul.f32 %v2452_v33, %v2452_v33  ;;  %v2457_v14 = vpop.f32.mrb[15].mxu1 }
 0x2a7   :  { %v1073_v17 = vadd.f32 %v1072_v1, %v1028_v46  ;;  %v998_v18 = vadd.f32 %v997_v36, %v2457_v14  ;;  %v1030_v20 = vmul.f32 %v2457_v14, %v2457_v14 }
 0x2a8   :  { %v1053_v58 = vadd.f32 %v1052_v7, %v1029_v13 }
 0x2a9   :  { %v1074_v57 = vadd.f32 %v1073_v17, %v1030_v20 }
 0x2ab   :  { %v2462_v5 = vpop.f32.mrb[16].mxu1 }
 0x2ac   :  { %v978_v31 = vadd.f32 %v977_v10, %v2462_v5  ;;  %v1031_v3 = vmul.f32 %v2462_v5, %v2462_v5  ;;  %v2467_v41 = vpop.f32.mrb[17].mxu1 }
 0x2ad   :  { %v999_v61 = vadd.f32 %v998_v18, %v2467_v41  ;;  %v1032_v8 = vmul.f32 %v2467_v41, %v2467_v41  ;;  %v2472_v22 = vpop.f32.mrb[18].mxu1 }
 0x2ae   :  { %v1054_v15 = vadd.f32 %v1053_v58, %v1031_v3  ;;  %v979_v54 = vadd.f32 %v978_v31, %v2472_v22  ;;  %v1033_v24 = vmul.f32 %v2472_v22, %v2472_v22  ;;  %v2477_v2 = vpop.f32.mrb[19].mxu1 }
 0x2af   :  { %v1075_v21 = vadd.f32 %v1074_v57, %v1032_v8  ;;  %v1000_v26 = vadd.f32 %v999_v61, %v2477_v2  ;;  %v1034_v29 = vmul.f32 %v2477_v2, %v2477_v2 }
 0x2b0   :  { %v1055_v27 = vadd.f32 %v1054_v15, %v1033_v24 }
 0x2b1   :  { %v1076_v40 = vadd.f32 %v1075_v21, %v1034_v29 }
 0x2b3   :  { %v2482_v47 = vpop.f32.mrb[20].mxu1 }
 0x2b4   :  { %v980_v37 = vadd.f32 %v979_v54, %v2482_v47  ;;  %v1035_v32 = vmul.f32 %v2482_v47, %v2482_v47  ;;  %v2487_v35 = vpop.f32.mrb[21].mxu1 }
 0x2b5   :  { %v1001_v4 = vadd.f32 %v1000_v26, %v2487_v35  ;;  %v1036_v39 = vmul.f32 %v2487_v35, %v2487_v35  ;;  %v2492_v43 = vpop.f32.mrb[22].mxu1 }
 0x2b6   :  { %v1056_v56 = vadd.f32 %v1055_v27, %v1035_v32  ;;  %v981_v44 = vadd.f32 %v980_v37, %v2492_v43  ;;  %v1037_v53 = vmul.f32 %v2492_v43, %v2492_v43  ;;  %v2497_v50 = vpop.f32.mrb[23].mxu1 }
 0x2b7   :  { %v1077_v51 = vadd.f32 %v1076_v40, %v1036_v39  ;;  %v1002_v62 = vadd.f32 %v1001_v4, %v2497_v50  ;;  %v1038_v16 = vmul.f32 %v2497_v50, %v2497_v50 }
 0x2b8   :  { %v1057_v55 = vadd.f32 %v1056_v56, %v1037_v53 }
 0x2b9   :  { %v1078_v60 = vadd.f32 %v1077_v51, %v1038_v16 }
 0x2bb   :  { %v2502_v1 = vpop.f32.mrb[24].mxu1 }
 0x2bc   :  { %v982_v25 = vadd.f32 %v981_v44, %v2502_v1  ;;  %v1039_v12 = vmul.f32 %v2502_v1, %v2502_v1  ;;  %v2507_v36 = vpop.f32.mrb[25].mxu1 }
 0x2bd   :  { %v1003_v46 = vadd.f32 %v1002_v62, %v2507_v36  ;;  %v1040_v7 = vmul.f32 %v2507_v36, %v2507_v36  ;;  %v2512_v10 = vpop.f32.mrb[26].mxu1 }
 0x2be   :  { %v1058_v13 = vadd.f32 %v1057_v55, %v1039_v12  ;;  %v983_v17 = vadd.f32 %v982_v25, %v2512_v10  ;;  %v1041_v18 = vmul.f32 %v2512_v10, %v2512_v10  ;;  %v2517_v20 = vpop.f32.mrb[27].mxu1 }
 0x2bf   :  { %v1079_v58 = vadd.f32 %v1078_v60, %v1040_v7  ;;  %v1004_v57 = vadd.f32 %v1003_v46, %v2517_v20  ;;  %v1042_v31 = vmul.f32 %v2517_v20, %v2517_v20 }
 0x2c0   :  { %v1059_v3 = vadd.f32 %v1058_v13, %v1041_v18 }
 0x2c1   :  { %v1080_v61 = vadd.f32 %v1079_v58, %v1042_v31 }
 0x2c3   :  { %v2522_v8 = vpop.f32.mrb[28].mxu1 }
 0x2c4   :  { %v984_v15 = vadd.f32 %v983_v17, %v2522_v8  ;;  %v1043_v54 = vmul.f32 %v2522_v8, %v2522_v8  ;;  %v2527_v24 = vpop.f32.mrb[29].mxu1 }
 0x2c5   :  { %v1005_v21 = vadd.f32 %v1004_v57, %v2527_v24  ;;  %v1044_v26 = vmul.f32 %v2527_v24, %v2527_v24  ;;  %v2532_v29 = vpop.f32.mrb[30].mxu1 }
 0x2c6   :  { %v1060_v27 = vadd.f32 %v1059_v3, %v1043_v54  ;;  %v985_v40 = vadd.f32 %v984_v15, %v2532_v29  ;;  %v1045_v37 = vmul.f32 %v2532_v29, %v2532_v29  ;;  %v968_v32 = vpop.f32.mrb[31].mxu1 }
 0x2c7   :  { %v1081_v4 = vadd.f32 %v1080_v61, %v1044_v26  ;;  %v1006_v39 = vadd.f32 %v1005_v21, %v968_v32  ;;  %v1046_v56 = vmul.f32 %v968_v32, %v968_v32 }
 0x2c8   :  { %v986_v44 = vrot.slane %v985_v40, 4  ;;  %v1061_v53 = vadd.f32 %v1060_v27, %v1045_v37 }
 0x2c9   :  { %v1007_v51 = vrot.slane %v1006_v39, 4  ;;  %v1082_v62 = vadd.f32 %v1081_v4, %v1046_v56 }
 0x2ca   :  { %v987_v16 = vadd.f32 %v986_v44, %v985_v40  ;;  %v1062_v55 = vrot.slane %v1061_v53, 4 }
 0x2cb   :  { %v1008_v60 = vadd.f32 %v1007_v51, %v1006_v39  ;;  %v1083_v25 = vrot.slane %v1082_v62, 4 }
 0x2cc   :  { %v988_v12 = vrot.slane %v987_v16, 2  ;;  %v1063_v46 = vadd.f32 %v1062_v55, %v1061_v53 }
 0x2cd   :  { %v1009_v7 = vrot.slane %v1008_v60, 2  ;;  %v1084_v13 = vadd.f32 %v1083_v25, %v1082_v62 }
 0x2ce   :  { %v989_v17 = vadd.f32 %v988_v12, %v987_v16  ;;  %v1064_v18 = vrot.slane %v1063_v46, 2 }
 0x2cf   :  { %v1010_v58 = vadd.f32 %v1009_v7, %v1008_v60  ;;  %v1085_v57 = vrot.slane %v1084_v13, 2 }
 0x2d0   :  { %v990_v31 = vrot.slane %v989_v17, 1  ;;  %v1065_v3 = vadd.f32 %v1064_v18, %v1063_v46 }
 0x2d1   :  { %v1011_v61 = vrot.slane %v1010_v58, 1  ;;  %v1086_v15 = vadd.f32 %v1085_v57, %v1084_v13  ;;  %v1095_v13 = vld [vmem:[%s2701_s5] sm:$0x3] }
 0x2d2   :  { %v991_v54 = vadd.f32 %v990_v31, %v989_v17  ;;  %v1066_v21 = vrot.slane %v1065_v3, 1 }
 0x2d3   :  { %v1012_v26 = vadd.f32 %v1011_v61, %v1010_v58  ;;  %v1087_v27 = vrot.slane %v1086_v15, 1 }
 0x2d4   :  { %v1013_v40 = vmul.f32 0.0078125, %v991_v54  ;;  %v1067_v37 = vadd.f32 %v1066_v21, %v1065_v3 }
 0x2d5   :  { %v1014_v4 = vmul.f32 0.0078125, %v1012_v26  ;;  %v1088_v39 = vadd.f32 %v1087_v27, %v1086_v15 }
 0x2d6   :  { %v1089_v56 = vmul.f32 0.0078125, %v1067_v37  ;;  %v1091_v44 = vmul.f32 %v1013_v40, %v1013_v40 }
 0x2d7   :  { %v1090_v53 = vmul.f32 0.0078125, %v1088_v39  ;;  %v1092_v51 = vmul.f32 %v1014_v4, %v1014_v4 }
 0x2d8   :  { %v1093_v62 = vsub.f32 %v1089_v56, %v1091_v44 }
 0x2d9   :  { %v1094_v16 = vsub.f32 %v1090_v53, %v1092_v51 }
 0x2da   :  { %v1096_v55 = vadd.f32 1e-05, %v1093_v62 }
 0x2db   :  { %v1097_v60 = vadd.f32 1e-05, %v1094_v16 }
 0x2dc   :  { %1822 = vrsqrt.f32 %v1096_v55 }
 0x2dd   :  { %1824 = vrsqrt.f32 %v1097_v60 }
 0x2e6   :  { %v1823_v25 = vpop.eup %1822 }
 0x2e7   :  { %v1825_v12 = vpop.eup %1824 }
 0x2e8   :  { %v1102_v46 = vcombine.low %v1823_v25, %v1825_v12 }
 0x2ea   :  { %v1109_v7 = vrot.slane %v1102_v46, %v2259_v34 }
 0x2ec   :  { %v1116_v17 = vrot.slane %v1109_v7, %v2259_v34 }
 0x2ee   :  { %v1118_v18 = vmul.f32 %v1116_v17, %v1095_v13 }
 0x2f0   :  { %v1124_v58 = vrot.slane %v1118_v18, %v2266_v45  ;;  %v1128_v57 = vrot.slane %v1118_v18, %v2268_v48 }
 0x2f2   :  { %v1131_v31 = vmul.f32 %v1124_v58, %v1013_v40  ;;  %v1132_v3 = vmul.f32 %v1128_v57, %v1014_v4  ;;  %v1183_v61 = vmul.f32 %v1128_v57, %v968_v32  ;;  %v1153_v15 = vmul.f32 %v1128_v57, %v2384_v9 }
 0x2f3   :  { %v1155_v54 = vmul.f32 %v1128_v57, %v2394_v59  ;;  %v1177_v21 = vmul.f32 %v1128_v57, %v2507_v36  ;;  %v1179_v26 = vmul.f32 %v1128_v57, %v2517_v20  ;;  %v1152_v27 = vmul.f32 %v1124_v58, %v2382_v0 }
 0x2f4   :  { %v1135_v37 = vcombine.low %v1131_v31, %v1132_v3  ;;  %v1154_v39 = vmul.f32 %v1124_v58, %v2386_v63  ;;  %v1176_v56 = vmul.f32 %v1124_v58, %v2502_v1  ;;  %v1178_v44 = vmul.f32 %v1124_v58, %v2512_v10  ;;  %v1119_v1 = vld [vmem:[%s2702_s6] sm:$0x3] }
 0x2f5   :  { %v1157_v40 = vmul.f32 %v1128_v57, %v2407_v23  ;;  %v1159_v32 = vmul.f32 %v1128_v57, %v2417_v30  ;;  %v1181_v9 = vmul.f32 %v1128_v57, %v2527_v24  ;;  %v1156_v59 = vmul.f32 %v1124_v58, %v2402_v11 }
 0x2f6   :  { %v1142_v36 = vrot.slane %v1135_v37, %v2259_v34  ;;  %v1158_v20 = vmul.f32 %v1124_v58, %v2412_v28  ;;  %v1180_v0 = vmul.f32 %v1124_v58, %v2522_v8  ;;  %v1182_v63 = vmul.f32 %v1124_v58, %v2532_v29 }
 0x2f7   :  { %v1161_v23 = vmul.f32 %v1128_v57, %v2427_v42  ;;  %v1163_v30 = vmul.f32 %v1128_v57, %v2437_v52  ;;  %v2566_v10 = vmul.f32 %v1124_v58, %v2422_v38  ;;  %v2569_v11 = vmul.f32 %v1124_v58, %v2432_v49 }
 0x2f8   :  { %v1149_v28 = vrot.slane %v1142_v36, %v2259_v34  ;;  %v2573_v8 = vmul.f32 %v1128_v57, %v2447_v19  ;;  %v2576_v24 = vmul.f32 %v1128_v57, %v2457_v14  ;;  %v2579_v29 = vmul.f32 %v1124_v58, %v2442_v6 }
 0x2f9   :  { %v2582_v42 = vmul.f32 %v1124_v58, %v2452_v33  ;;  %v2585_v38 = vmul.f32 %v1128_v57, %v2467_v41  ;;  %v2588_v49 = vmul.f32 %v1128_v57, %v2477_v2  ;;  %v2591_v34 = vmul.f32 %v1124_v58, %v2462_v5 }
 0x2fa   :  { %v1151_v52 = vsub.f32 %v1119_v1, %v1149_v28  ;;  %v2594_v19 = vmul.f32 %v1124_v58, %v2472_v22  ;;  %v2597_v14 = vmul.f32 %v1128_v57, %v2487_v35  ;;  %v2600_v6 = vmul.f32 %v1128_v57, %v2497_v50 }
 0x2fb   :  { %v2603_v33 = vmul.f32 %v1124_v58, %v2482_v47  ;;  %v2606_v41 = vmul.f32 %v1124_v58, %v2492_v43 }
 0x2fc   :  { %v2609_v2 = vrot.slane %v1151_v52, %v2266_v45  ;;  %v2612_v5 = vrot.slane %v1151_v52, %v2268_v48 }
 0x2fe   :  { %v1226_v22 = vadd.f32 %v2612_v5, %v1183_v61  ;;  %v1196_v35 = vadd.f32 %v2612_v5, %v1153_v15  ;;  %v1198_v4 = vadd.f32 %v2612_v5, %v1155_v54  ;;  %v1220_v50 = vadd.f32 %v2612_v5, %v1177_v21 }
 0x2ff   :  { %v1222_v47 = vadd.f32 %v2612_v5, %v1179_v26  ;;  %v1195_v53 = vadd.f32 %v2609_v2, %v1152_v27  ;;  %v1197_v43 = vadd.f32 %v2609_v2, %v1154_v39  ;;  %v1219_v45 = vadd.f32 %v2609_v2, %v1176_v56 }
 0x300   :  { %v1228_v51 = vmax.f32 %v1196_v35, 0.0  ;;  %v1230_v62 = vmax.f32 %v1198_v4, 0.0  ;;  %v1252_v48 = vmax.f32 %v1220_v50, 0.0  ;;  %v1221_v16 = vadd.f32 %v2609_v2, %v1178_v44 }
 0x301   :  { %v1254_v55 = vmax.f32 %v1222_v47, 0.0  ;;  %v1227_v60 = vmax.f32 %v1195_v53, 0.0  ;;  %v1229_v25 = vmax.f32 %v1197_v43, 0.0  ;;  %v1251_v12 = vmax.f32 %v1219_v45, 0.0 }
 0x302   :  { %v1260_v46 = vpack.c.bf16 %v1230_v62, %v1228_v51  ;;  %v1253_v7 = vmax.f32 %v1221_v16, 0.0  ;;  %v1200_v13 = vadd.f32 %v2612_v5, %v1157_v40  ;;  %v1202_v17 = vadd.f32 %v2612_v5, %v1159_v32 }
 0x303   :  { %v1272_v18 = vpack.c.bf16 %v1254_v55, %v1252_v48  ;;  %v1259_v58 = vpack.c.bf16 %v1229_v25, %v1227_v60  ;;  %v1224_v57 = vadd.f32 %v2612_v5, %v1181_v9  ;;  %v1258_v31 = vmax.f32 %v1226_v22, 0.0 }
 0x304   :  { %1442 = vmatprep.mubr.bf16.mxu0 %v1260_v46  ;;  %v1271_v3 = vpack.c.bf16 %v1253_v7, %v1251_v12  ;;  %v1232_v61 = vmax.f32 %v1200_v13, 0.0  ;;  %v1234_v15 = vmax.f32 %v1202_v17, 0.0  ;;  %v1199_v54 = vadd.f32 %v2609_v2, %v1156_v59 }
 0x305   :  { %1490 = vmatprep.mubr.bf16.mxu1 %v1272_v18  ;;  %1443 = vmatmul.mubr.bf16.vlgmr.msra.gmra.mrb[32].mxu0 %v1259_v58  ;;  %v1256_v21 = vmax.f32 %v1224_v57, 0.0  ;;  %v1201_v26 = vadd.f32 %v2609_v2, %v1158_v20  ;;  %v1223_v27 = vadd.f32 %v2609_v2, %v1180_v0  ;;  %v1225_v37 = vadd.f32 %v2609_v2, %v1182_v63 }
 0x306   :  { %1491 = vmatmul.mubr.bf16.vlgmr.msra.gmra.mrb[32].mxu1 %v1271_v3  ;;  %v1262_v39 = vpack.c.bf16 %v1234_v15, %v1232_v61  ;;  %v1231_v56 = vmax.f32 %v1199_v54, 0.0  ;;  %v1204_v44 = vadd.f32 %v2612_v5, %v1161_v23  ;;  %v1206_v40 = vadd.f32 %v2612_v5, %v1163_v30 }
 0x307   :  { %v1274_v32 = vpack.c.bf16 %v1258_v31, %v1256_v21  ;;  %v1233_v9 = vmax.f32 %v1201_v26, 0.0  ;;  %v1255_v36 = vmax.f32 %v1223_v27, 0.0  ;;  %v1257_v59 = vmax.f32 %v1225_v37, 0.0 }
 0x308   :  { %1450 = vmatprep.mubr.bf16.mxu0 %v1262_v39  ;;  %v1236_v1 = vmax.f32 %v1204_v44, 0.0  ;;  %v1238_v28 = vmax.f32 %v1206_v40, 0.0  ;;  %v1203_v20 = vadd.f32 %v2609_v2, %v2566_v10  ;;  %v1205_v0 = vadd.f32 %v2609_v2, %v2569_v11 }
 0x309   :  { %1498 = vmatprep.mubr.bf16.mxu1 %v1274_v32  ;;  %v1261_v63 = vpack.c.bf16 %v1233_v9, %v1231_v56  ;;  %v1273_v52 = vpack.c.bf16 %v1257_v59, %v1255_v36  ;;  %v1208_v23 = vadd.f32 %v2612_v5, %v2573_v8  ;;  %v1210_v30 = vadd.f32 %v2612_v5, %v2576_v24 }
 0x30a   :  { %v1264_v22 = vpack.c.bf16 %v1238_v28, %v1236_v1  ;;  %v1235_v35 = vmax.f32 %v1203_v20, 0.0  ;;  %v1237_v4 = vmax.f32 %v1205_v0, 0.0  ;;  %v1207_v50 = vadd.f32 %v2609_v2, %v2579_v29 }
 0x30b   :  { %v1240_v47 = vmax.f32 %v1208_v23, 0.0  ;;  %v1242_v10 = vmax.f32 %v1210_v30, 0.0  ;;  %v1209_v11 = vadd.f32 %v2609_v2, %v2582_v42  ;;  %v1212_v53 = vadd.f32 %v2612_v5, %v2585_v38 }
 0x30c   :  { %v1263_v43 = vpack.c.bf16 %v1237_v4, %v1235_v35  ;;  %v1239_v45 = vmax.f32 %v1207_v50, 0.0  ;;  %v1214_v8 = vadd.f32 %v2612_v5, %v2588_v49  ;;  %v1211_v24 = vadd.f32 %v2609_v2, %v2591_v34 }
 0x30d   :  { %1451 = vmatmul.mubr.bf16.gmra.mrb[36].mxu0 %v1261_v63  ;;  %v1266_v51 = vpack.c.bf16 %v1242_v10, %v1240_v47  ;;  %v1241_v62 = vmax.f32 %v1209_v11, 0.0  ;;  %v1244_v29 = vmax.f32 %v1212_v53, 0.0  ;;  %v1213_v48 = vadd.f32 %v2609_v2, %v2594_v19 }
 0x30e   :  { %1499 = vmatmul.mubr.bf16.gmra.mrb[36].mxu1 %v1273_v52  ;;  %1458 = vmatprep.mubr.bf16.mxu0 %v1264_v22  ;;  %v1246_v42 = vmax.f32 %v1214_v8, 0.0  ;;  %v1243_v16 = vmax.f32 %v1211_v24, 0.0  ;;  %v1216_v38 = vadd.f32 %v2612_v5, %v2597_v14  ;;  %v1218_v49 = vadd.f32 %v2612_v5, %v2600_v6 }
 0x30f   :  { %v1265_v55 = vpack.c.bf16 %v1241_v62, %v1239_v45  ;;  %v1245_v60 = vmax.f32 %v1213_v48, 0.0  ;;  %v1215_v34 = vadd.f32 %v2609_v2, %v2603_v33  ;;  %v1217_v25 = vadd.f32 %v2609_v2, %v2606_v41  ;;  %v2663_v33 = vld [vmem:[%s2704_s8] ss:$0 sm:$0xff]  ;;  %s1986_s8 = smov [#allocation10]  }
 0x310   :  { %v1268_v12 = vpack.c.bf16 %v1246_v42, %v1244_v29  ;;  %v1248_v19 = vmax.f32 %v1216_v38, 0.0  ;;  %v1250_v46 = vmax.f32 %v1218_v49, 0.0  ;;  %s1544_s25 = sshll.u32 %s1986_s8, 4  ;;  %s1545_s25 = int_to_ptr.vmem [resolvable:$true] %s1544_s25 }
 0x311   :  { %v1267_v7 = vpack.c.bf16 %v1245_v60, %v1243_v16  ;;  %v1247_v13 = vmax.f32 %v1215_v34, 0.0  ;;  %v1249_v17 = vmax.f32 %v1217_v25, 0.0  ;;  %s1946_s26 = scalar_lea.vmem %s1545_s25, 2048  ;;  %p1951_p5 = scmp.lt.s32.totalorder %s1545_s25, %s1545_s25 }
 0x312   :  { %v1270_v18 = vpack.c.bf16 %v1250_v46, %v1248_v19  ;;  %p1947_p4 = scmp.ne.s32.totalorder %s1545_s25, %s1946_s26  ;;  %p1952_p6 = scmp.lt.s32.totalorder %s1946_s26, %s1946_s26 }
 0x313   :  { %v1269_v58 = vpack.c.bf16 %v1249_v17, %v1247_v13 }
 0x314   :  { %p1953_p7 = por %p1952_p6, %p1951_p5 }
 0x315   :  { %1459 = vmatmul.mubr.bf16.gmra.mrb[40].mxu0 %v1263_v43 }
 0x316   :  { %1466 = vmatprep.mubr.bf16.mxu0 %v1266_v51  ;;  %p1954_p8 = pnand %p1953_p7, %p1947_p4 }
 0x31d   :  { %1467 = vmatmul.mubr.bf16.gmra.mrb[44].mxu0 %v1265_v55 }
 0x31e   :  { %1474 = vmatprep.mubr.bf16.mxu0 %v1268_v12 }
 0x325   :  { %1475 = vmatmul.mubr.bf16.gmra.mrb[48].mxu0 %v1267_v7 }
 0x326   :  { %1482 = vmatprep.mubr.bf16.mxu0 %v1270_v18 }
 0x32d   :  { %1483 = vmatmul.mubr.bf16.gmra.mrb[52].mxu0 %v1269_v58 }
 0x3d8   :  { %v1647_v14 = vpop.f32.mrb[32].mxu0 }
 0x3d9   :  { %v1683_v6 = vpop.f32.mrb[32].mxu1  ;;  %v1648_v41 = vpop.f32.mrb[33].mxu0 }
 0x3da   :  { %v1649_v2 = vadd.f32 %v1648_v41, %v1647_v14  ;;  %v1684_v5 = vpop.f32.mrb[33].mxu1  ;;  %v1650_v57 = vpop.f32.mrb[34].mxu0 }
 0x3db   :  { %v1685_v31 = vadd.f32 %v1684_v5, %v1683_v6  ;;  %v1686_v3 = vpop.f32.mrb[34].mxu1  ;;  %v1651_v61 = vpop.f32.mrb[35].mxu0 }
 0x3dc   :  { %v1445_v15 = vadd.f32 %v1649_v2, %v2663_v33  ;;  %v1652_v54 = vadd.f32 %v1651_v61, %v1650_v57  ;;  %v1687_v21 = vpop.f32.mrb[35].mxu1 }
 0x3dd   :  { %v1493_v26 = vadd.f32 %v1685_v31, %v2663_v33  ;;  %v1688_v27 = vadd.f32 %v1687_v21, %v1686_v3 }
 0x3de   :  { %1826 = vtanh.f32 %v1445_v15  ;;  %v1448_v37 = vadd.f32 %v1652_v54, %v2663_v33 }
 0x3df   :  { %1828 = vtanh.f32 %v1493_v26  ;;  %v1496_v39 = vadd.f32 %v1688_v27, %v2663_v33 }
 0x3e0   :  { %1830 = vtanh.f32 %v1448_v37  ;;  %v1653_v56 = vpop.f32.mrb[36].mxu0 }
 0x3e1   :  { %1832 = vtanh.f32 %v1496_v39  ;;  %v1689_v44 = vpop.f32.mrb[36].mxu1  ;;  %v1654_v40 = vpop.f32.mrb[37].mxu0 }
 0x3e2   :  { %v1655_v32 = vadd.f32 %v1654_v40, %v1653_v56  ;;  %v1690_v9 = vpop.f32.mrb[37].mxu1  ;;  %v1656_v36 = vpop.f32.mrb[38].mxu0 }
 0x3e3   :  { %v1691_v59 = vadd.f32 %v1690_v9, %v1689_v44  ;;  %v1692_v1 = vpop.f32.mrb[38].mxu1  ;;  %v1657_v28 = vpop.f32.mrb[39].mxu0 }
 0x3e4   :  { %v1453_v20 = vadd.f32 %v1655_v32, %v2663_v33  ;;  %v1658_v0 = vadd.f32 %v1657_v28, %v1656_v36  ;;  %v1693_v63 = vpop.f32.mrb[39].mxu1 }
 0x3e5   :  { %v1501_v52 = vadd.f32 %v1691_v59, %v2663_v33  ;;  %v1694_v23 = vadd.f32 %v1693_v63, %v1692_v1 }
 0x3e6   :  { %1834 = vtanh.f32 %v1453_v20  ;;  %v1456_v30 = vadd.f32 %v1658_v0, %v2663_v33 }
 0x3e7   :  { %1836 = vtanh.f32 %v1501_v52  ;;  %v1504_v22 = vadd.f32 %v1694_v23, %v2663_v33 }
 0x3e8   :  { %v1827_v35 = vpop.eup %1826  ;;  %1838 = vtanh.f32 %v1456_v30  ;;  %v1659_v4 = vpop.f32.mrb[40].mxu0 }
 0x3e9   :  { %v1829_v50 = vpop.eup %1828  ;;  %1523 = vst [vmem:[#allocation10] sm:$0xff] %v1827_v35  ;;  %1840 = vtanh.f32 %v1504_v22  ;;  %v1660_v47 = vpop.f32.mrb[41].mxu0 }
 0x3ea   :  { %v1831_v10 = vpop.eup %1830  ;;  %1535 = vst [vmem:[#allocation10 + $0x60] sm:$0xff] %v1829_v50  ;;  %v1661_v11 = vadd.f32 %v1660_v47, %v1659_v4  ;;  %v1662_v53 = vpop.f32.mrb[42].mxu0 }
 0x3eb   :  { %v1833_v43 = vpop.eup %1832  ;;  %1524 = vst [vmem:[#allocation10 + $0x8] sm:$0xff] %v1831_v10  ;;  %v1663_v45 = vpop.f32.mrb[43].mxu0 }
 0x3ec   :  { %1536 = vst [vmem:[#allocation10 + $0x68] sm:$0xff] %v1833_v43  ;;  %v1461_v8 = vadd.f32 %v1661_v11, %v2663_v33  ;;  %v1664_v24 = vadd.f32 %v1663_v45, %v1662_v53 }
 0x3ee   :  { %1842 = vtanh.f32 %v1461_v8  ;;  %v1464_v51 = vadd.f32 %v1664_v24, %v2663_v33 }
 0x3f0   :  { %v1835_v62 = vpop.eup %1834  ;;  %1844 = vtanh.f32 %v1464_v51  ;;  %v1665_v29 = vpop.f32.mrb[44].mxu0 }
 0x3f1   :  { %v1837_v48 = vpop.eup %1836  ;;  %1525 = vst [vmem:[#allocation10 + $0x10] sm:$0xff] %v1835_v62  ;;  %v1666_v42 = vpop.f32.mrb[45].mxu0 }
 0x3f2   :  { %v1839_v16 = vpop.eup %1838  ;;  %1537 = vst [vmem:[#allocation10 + $0x70] sm:$0xff] %v1837_v48  ;;  %v1667_v38 = vadd.f32 %v1666_v42, %v1665_v29  ;;  %v1668_v49 = vpop.f32.mrb[46].mxu0 }
 0x3f3   :  { %v1841_v55 = vpop.eup %1840  ;;  %1526 = vst [vmem:[#allocation10 + $0x18] sm:$0xff] %v1839_v16  ;;  %v1669_v60 = vpop.f32.mrb[47].mxu0 }
 0x3f4   :  { %1538 = vst [vmem:[#allocation10 + $0x78] sm:$0xff] %v1841_v55  ;;  %v1469_v34 = vadd.f32 %v1667_v38, %v2663_v33  ;;  %v1670_v25 = vadd.f32 %v1669_v60, %v1668_v49 }
 0x3f6   :  { %1846 = vtanh.f32 %v1469_v34  ;;  %v1472_v12 = vadd.f32 %v1670_v25, %v2663_v33 }
 0x3f8   :  { %v1843_v19 = vpop.eup %1842  ;;  %1848 = vtanh.f32 %v1472_v12  ;;  %v1671_v46 = vpop.f32.mrb[48].mxu0 }
 0x3f9   :  { %1527 = vst [vmem:[#allocation10 + $0x20] sm:$0xff] %v1843_v19  ;;  %v1672_v7 = vpop.f32.mrb[49].mxu0 }
 0x3fa   :  { %v1845_v13 = vpop.eup %1844  ;;  %v1673_v17 = vadd.f32 %v1672_v7, %v1671_v46  ;;  %v1674_v18 = vpop.f32.mrb[50].mxu0 }
 0x3fb   :  { %1528 = vst [vmem:[#allocation10 + $0x28] sm:$0xff] %v1845_v13  ;;  %v1675_v58 = vpop.f32.mrb[51].mxu0 }
 0x3fc   :  { %v1477_v14 = vadd.f32 %v1673_v17, %v2663_v33  ;;  %v1676_v6 = vadd.f32 %v1675_v58, %v1674_v18 }
 0x3fe   :  { %1850 = vtanh.f32 %v1477_v14  ;;  %v1480_v41 = vadd.f32 %v1676_v6, %v2663_v33 }
 0x400   :  { %v1847_v2 = vpop.eup %1846  ;;  %1852 = vtanh.f32 %v1480_v41  ;;  %v1677_v5 = vpop.f32.mrb[52].mxu0 }
 0x401   :  { %1529 = vst [vmem:[#allocation10 + $0x30] sm:$0xff] %v1847_v2  ;;  %v1678_v57 = vpop.f32.mrb[53].mxu0 }
 0x402   :  { %v1849_v31 = vpop.eup %1848  ;;  %v1679_v3 = vadd.f32 %v1678_v57, %v1677_v5  ;;  %v1680_v61 = vpop.f32.mrb[54].mxu0 }
 0x403   :  { %1530 = vst [vmem:[#allocation10 + $0x38] sm:$0xff] %v1849_v31  ;;  %v1681_v15 = vpop.f32.mrb[55].mxu0 }
 0x404   :  { %v1485_v54 = vadd.f32 %v1679_v3, %v2663_v33  ;;  %v1682_v21 = vadd.f32 %v1681_v15, %v1680_v61 }
 0x406   :  { %1854 = vtanh.f32 %v1485_v54  ;;  %v1488_v26 = vadd.f32 %v1682_v21, %v2663_v33 }
 0x408   :  { %v1851_v27 = vpop.eup %1850  ;;  %1856 = vtanh.f32 %v1488_v26 }
 0x409   :  { %1531 = vst [vmem:[#allocation10 + $0x40] sm:$0xff] %v1851_v27 }
 0x40a   :  { %v1853_v37 = vpop.eup %1852 }
 0x40b   :  { %1532 = vst [vmem:[#allocation10 + $0x48] sm:$0xff] %v1853_v37 }
 0x410   :  { %v1855_v39 = vpop.eup %1854 }
 0x411   :  { %1533 = vst [vmem:[#allocation10 + $0x50] sm:$0xff] %v1855_v39 }
 0x412   :  { %v1857_v56 = vpop.eup %1856 }
 0x413   :  { %1534 = vst [vmem:[#allocation10 + $0x58] sm:$0xff] %v1857_v56 }
 0x414   :  { %1957 = shalt.err (!%p1954_p8)
}
 0x415   :  { %s1958_s0 = scalar_lea.hbm %s2705_s9, 2048 }
 0x416   :  { %p1959_p9 = scmp.ne.s32.totalorder %s2705_s9, %s1958_s0  ;;  %p1962_p10 = scmp.lt.u32.totalorder %s1958_s0, %s2705_s9 }
 0x418   :  { %p1964_p11 = pnand %p1962_p10, %p1959_p9 }
 0x41a   :  { %1967 = shalt.err (!%p1964_p11)
}
 0x41b   :  { %1550 = dma.vmem_to_hbm [thread:$0]  %s1545_s25, 2048, %s2705_s9, [#allocation4], %s1977_s19, %s1977_s19, %s1978_s20  }
 0x41c   :  { %1974 = dma.done.wait [#allocation4], 2048  }
 0x41d   :  { %1975 = vsyncadd [#allocation4], 4294965248 }
 0x41e   :  { %1554 = vsyncpa [#allocation3], 1 }
 0x41f   :  { %1555 = vsyncpa [#allocation6], 1 }
 0x420   :  { %1556 = vsyncpa [#allocation9], 1 }
 0x421   :  { %1557 = vsyncpa [#allocation4], 1 }

</bundles_post_ra>
